<compile_context>
chip_gen: v5e
topology: v5e:2x2
jax: 0.10.0
libtpu: 0.0.40
codegen_flags: <defaults>
</compile_context>

<pallas_src>
import functools

import jax
import jax.numpy as jnp
from jax.experimental import pallas as pl
from jax.experimental.pallas import tpu as pltpu

LANE = 128      # vreg lane width  (last dim)
SUBLANE = 8     # vreg sublane count (second-to-last dim)


def _round_up(n, m):
    return ((n + m - 1) // m) * m


def _pad2d(a, rows, cols):
    r, c = a.shape
    return jnp.pad(a, ((0, rows - r), (0, cols - c)))


# -----------------------------------------------------------------------------
# Pallas kernel: full SuperGIN forward on zero-padded, VMEM-resident arrays.
# -----------------------------------------------------------------------------
def _supergin_kernel(x_ref, adj_ref, maskt_ref, *rest,
                     n_graphs: int, negative_slope: float, eps: float):
    *w, out_ref = rest
    # Weight refs (pairs of (W, b); eval BatchNorm already folded host-side):
    #   fc1  : w[0:8]   (4 layers)
    #   conv : w[8:12]  (Linear -> ReLU -> Linear)
    #   fc2  : w[12:20] (4 layers)
    dot = functools.partial(jnp.dot, preferred_element_type=jnp.float32)

    def linear(h, i):
        return dot(h, w[i][...]) + w[i + 1][...]

    def relu(h):
        return jnp.maximum(h, 0.0)

    def leaky(h):
        return jnp.where(h > 0, h, negative_slope * h)

    # ---- fc1: 4-layer MLP (Linear -> [folded BN] -> ReLU, plain last layer) ----
    h = x_ref[...]                                    # (Np, Fp)
    h = relu(linear(h, 0))
    h = relu(linear(h, 2))
    h = relu(linear(h, 4))
    h = linear(h, 6)                                  # (Np, Hp)
    h = leaky(h)

    # ---- GINEConv (edge_attr = 0): out_i = nn((1+eps)*h_i + sum_{j->i} relu(h_j)) ----
    agg = dot(adj_ref[...], relu(h))                  # dense sum-aggregation on the MXU
    z = (1.0 + eps) * h + agg
    z = relu(linear(z, 8))
    z = linear(z, 10)                                 # (Np, Hp)
    z = leaky(z)

    # ---- global_max_pool over the nodes of each graph ----
    maskt = maskt_ref[...]                            # (Np, Bp) membership, 0/1
    neg = jnp.float32(-1e30)
    hp = z.shape[1]
    rows = []
    for b in range(n_graphs):                         # static unroll (small B)
        member = maskt[:, b:b + 1] > 0                # (Np, 1)
        rows.append(jnp.max(jnp.where(member, z, neg), axis=0, keepdims=True))
    pad_rows = maskt_ref.shape[1] - n_graphs
    if pad_rows > 0:                                  # sublane padding rows (sliced off on host)
        rows.append(jnp.zeros((pad_rows, hp), jnp.float32))
    pooled = jnp.concatenate(rows, axis=0)            # (Bp, Hp)

    # ---- fc2: 4-layer MLP ----
    g = relu(linear(pooled, 12))
    g = relu(linear(g, 14))
    g = relu(linear(g, 16))
    out_ref[...] = linear(g, 18)                      # (Bp, Op), lane-dense store


# -----------------------------------------------------------------------------
# Wrapper: fold eval-BatchNorm into the linears, zero-pad to (8, 128) granularity,
# launch the kernel, slice the valid block.
# -----------------------------------------------------------------------------
def supergin_forward(x, adj, mask, params, *, negative_slope=0.01, eps=0.0):
    """x: (N, n_in); adj: (N, N) with adj[i, j] = 1 iff edge j -> i;
    mask: (B, N) graph membership (0/1); params: see __main__."""
    n, f = x.shape
    bsz = mask.shape[0]
    hid = params["fc1"][0][0].shape[1]
    nout = params["fc2"][-1][0].shape[1]

    n_p = _round_up(n, LANE)       # node axis is the lane axis of adj
    f_p = _round_up(f, LANE)
    h_p = _round_up(hid, LANE)
    o_p = _round_up(nout, LANE)    # lane-dense output
    b_p = _round_up(bsz, SUBLANE)

    def fold(wl, bl, scale, shift):
        # eval-mode BatchNorm: y = x * scale + shift, folded into the Linear.
        if scale is None:
            return wl, bl
        return wl * scale[None, :], bl * scale + shift

    def prep(wl, bl, rows, cols):
        return [_pad2d(wl, rows, cols), _pad2d(bl[None, :], 1, cols)]

    flat = []
    for i, (wl, bl, s, t) in enumerate(params["fc1"]):
        wl, bl = fold(wl, bl, s, t)
        flat += prep(wl, bl, f_p if i == 0 else h_p, h_p)
    for wl, bl in params["conv"]:
        flat += prep(wl, bl, h_p, h_p)
    n_fc2 = len(params["fc2"])
    for i, (wl, bl, s, t) in enumerate(params["fc2"]):
        wl, bl = fold(wl, bl, s, t)
        flat += prep(wl, bl, h_p, o_p if i == n_fc2 - 1 else h_p)

    x_p = _pad2d(x, n_p, f_p)
    adj_p = _pad2d(adj, n_p, n_p)
    maskt_p = _pad2d(mask.T, n_p, b_p)

    vmem = lambda: pl.BlockSpec(memory_space=pltpu.MemorySpace.VMEM)
    out = pl.pallas_call(
        functools.partial(_supergin_kernel, n_graphs=bsz,
                          negative_slope=negative_slope, eps=eps),
        out_shape=jax.ShapeDtypeStruct((b_p, o_p), jnp.float32),
        in_specs=[vmem() for _ in range(3 + len(flat))],
        out_specs=vmem(),
    )(x_p, adj_p, maskt_p, *flat)
    return out[:bsz, :nout]


# -----------------------------------------------------------------------------
# Plain-JAX reference (unfolded BatchNorm, unpadded) for a correctness check.
# -----------------------------------------------------------------------------
def reference_forward(x, adj, mask, params, *, negative_slope=0.01, eps=0.0):
    def mlp(h, layers):
        last = len(layers) - 1
        for i, (wl, bl, s, t) in enumerate(layers):
            h = h @ wl + bl
            if s is not None:
                h = h * s + t              # eval-mode BatchNorm affine
            if i < last:
                h = jax.nn.relu(h)
        return h

    def leaky(h):
        return jnp.where(h > 0, h, negative_slope * h)

    h = leaky(mlp(x, params["fc1"]))
    agg = adj @ jax.nn.relu(h)                                   # GINE messages (edge_attr = 0)
    z = (1.0 + eps) * h + agg
    (wc1, bc1), (wc2, bc2) = params["conv"]
    z = leaky(jax.nn.relu(z @ wc1 + bc1) @ wc2 + bc2)
    masked = jnp.where(mask[:, :, None] > 0, z[None, :, :], -jnp.inf)
    pooled = jnp.max(masked, axis=1)                             # global_max_pool
    return mlp(pooled, params["fc2"])


if __name__ == "__main__":
    # Small shapes consistent with SuperGIN(nout, nhid, n_heads, n_in, dropout).
    # The spec's conv MLP is Sequential(Linear(n_in, nhid), ...) applied to nhid-dim
    # features, which only type-checks when n_in == nhid, so we use n_in == nhid.
    # (n_heads / dropout are stored by the module but unused in its forward.)
    N_NODES, N_IN, NHID, NOUT, N_GRAPHS = 12, 32, 32, 8, 2

    key = jax.random.PRNGKey(0)
    k_x, k_fc1, k_fc2, k_conv = jax.random.split(key, 4)

    def dense(k, din, dout):
        kw, kb = jax.random.split(k)
        return (0.2 * jax.random.normal(kw, (din, dout), jnp.float32),
                0.1 * jax.random.normal(kb, (dout,), jnp.float32))

    def bn_affine(k, dim):
        ks, kt = jax.random.split(k)
        return (1.0 + 0.1 * jax.random.normal(ks, (dim,), jnp.float32),
                0.1 * jax.random.normal(kt, (dim,), jnp.float32))

    def mlp_params(k, dims):
        n_layers = len(dims) - 1
        ks = jax.random.split(k, 2 * n_layers)
        layers = []
        for i in range(n_layers):
            wl, bl = dense(ks[2 * i], dims[i], dims[i + 1])
            if i < n_layers - 1:
                s, t = bn_affine(ks[2 * i + 1], dims[i + 1])
            else:
                s, t = None, None                      # plain last layer
            layers.append((wl, bl, s, t))
        return layers

    params = {
        "fc1": mlp_params(k_fc1, [N_IN, NHID, NHID, NHID, NHID]),
        "conv": [dense(kk, NHID, NHID) for kk in jax.random.split(k_conv, 2)],
        "fc2": mlp_params(k_fc2, [NHID, NHID, NHID, NHID, NOUT]),
    }

    x = jax.random.normal(k_x, (N_NODES, N_IN), jnp.float32)

    # Deterministic edge_index: N_GRAPHS disjoint graphs; each node i receives edges
    # from (i+1) and (i+2) within its own graph (PyG source -> target convention).
    per = N_NODES // N_GRAPHS
    src, dst = [], []
    for g in range(N_GRAPHS):
        base = g * per
        for a in range(per):
            for off in (1, 2):
                src.append(base + (a + off) % per)
                dst.append(base + a)
    src = jnp.asarray(src, jnp.int32)
    dst = jnp.asarray(dst, jnp.int32)
    adj = jnp.zeros((N_NODES, N_NODES), jnp.float32).at[dst, src].set(1.0)

    batch = jnp.repeat(jnp.arange(N_GRAPHS, dtype=jnp.int32), per)
    mask = jax.nn.one_hot(batch, N_GRAPHS, dtype=jnp.float32).T       # (B, N)

    y = supergin_forward(x, adj, mask, params)
    y = jax.block_until_ready(y)

    y_ref = reference_forward(x, adj, mask, params)
    assert y.shape == (N_GRAPHS, NOUT)
    assert jnp.allclose(y, y_ref, rtol=2e-3, atol=2e-3), "mismatch vs reference"

    print("KERNEL_OK")
</pallas_src>

<mosaic_0001>
module attributes {stable_mosaic.version = 11 : i64} {
  func.func @_supergin_kernel(%arg0: memref<128x128xf32, #tpu.memory_space<vmem>>, %arg1: memref<128x128xf32, #tpu.memory_space<vmem>>, %arg2: memref<128x8xf32, #tpu.memory_space<vmem>>, %arg3: memref<128x128xf32, #tpu.memory_space<vmem>>, %arg4: memref<1x128xf32, #tpu.memory_space<vmem>>, %arg5: memref<128x128xf32, #tpu.memory_space<vmem>>, %arg6: memref<1x128xf32, #tpu.memory_space<vmem>>, %arg7: memref<128x128xf32, #tpu.memory_space<vmem>>, %arg8: memref<1x128xf32, #tpu.memory_space<vmem>>, %arg9: memref<128x128xf32, #tpu.memory_space<vmem>>, %arg10: memref<1x128xf32, #tpu.memory_space<vmem>>, %arg11: memref<128x128xf32, #tpu.memory_space<vmem>>, %arg12: memref<1x128xf32, #tpu.memory_space<vmem>>, %arg13: memref<128x128xf32, #tpu.memory_space<vmem>>, %arg14: memref<1x128xf32, #tpu.memory_space<vmem>>, %arg15: memref<128x128xf32, #tpu.memory_space<vmem>>, %arg16: memref<1x128xf32, #tpu.memory_space<vmem>>, %arg17: memref<128x128xf32, #tpu.memory_space<vmem>>, %arg18: memref<1x128xf32, #tpu.memory_space<vmem>>, %arg19: memref<128x128xf32, #tpu.memory_space<vmem>>, %arg20: memref<1x128xf32, #tpu.memory_space<vmem>>, %arg21: memref<128x128xf32, #tpu.memory_space<vmem>>, %arg22: memref<1x128xf32, #tpu.memory_space<vmem>>, %arg23: memref<8x128xf32, #tpu.memory_space<vmem>>) attributes {dimension_semantics = [], scalar_prefetch = 0 : i64, scratch_operands = 0 : i64, tpu.core_type = #tpu.core_type<tc>} {
    %c0 = arith.constant 0 : index
    %c0_0 = arith.constant 0 : index
    %0 = vector.load %arg0[%c0, %c0_0] : memref<128x128xf32, #tpu.memory_space<vmem>>, vector<128x128xf32>
    %c0_1 = arith.constant 0 : index
    %c0_2 = arith.constant 0 : index
    %1 = vector.load %arg3[%c0_1, %c0_2] : memref<128x128xf32, #tpu.memory_space<vmem>>, vector<128x128xf32>
    %cst = arith.constant dense<0.000000e+00> : vector<128x128xf32>
    %2 = tpu.matmul %0, %1, %cst {dimension_numbers = #tpu.dot_dimension_numbers<[1], [0], [0], [1], [0, 0, 1, 1], [], []>} : vector<128x128xf32>, vector<128x128xf32>, vector<128x128xf32> -> vector<128x128xf32>
    %c0_3 = arith.constant 0 : index
    %c0_4 = arith.constant 0 : index
    %3 = vector.load %arg4[%c0_3, %c0_4] : memref<1x128xf32, #tpu.memory_space<vmem>>, vector<1x128xf32>
    %4 = vector.broadcast %3 : vector<1x128xf32> to vector<128x128xf32>
    %5 = arith.addf %2, %4 : vector<128x128xf32>
    %cst_5 = arith.constant 0.000000e+00 : f32
    %6 = vector.broadcast %cst_5 : f32 to vector<128x128xf32>
    %7 = arith.maximumf %5, %6 : vector<128x128xf32>
    %c0_6 = arith.constant 0 : index
    %c0_7 = arith.constant 0 : index
    %8 = vector.load %arg5[%c0_6, %c0_7] : memref<128x128xf32, #tpu.memory_space<vmem>>, vector<128x128xf32>
    %cst_8 = arith.constant dense<0.000000e+00> : vector<128x128xf32>
    %9 = tpu.matmul %7, %8, %cst_8 {dimension_numbers = #tpu.dot_dimension_numbers<[1], [0], [0], [1], [0, 0, 1, 1], [], []>} : vector<128x128xf32>, vector<128x128xf32>, vector<128x128xf32> -> vector<128x128xf32>
    %c0_9 = arith.constant 0 : index
    %c0_10 = arith.constant 0 : index
    %10 = vector.load %arg6[%c0_9, %c0_10] : memref<1x128xf32, #tpu.memory_space<vmem>>, vector<1x128xf32>
    %11 = vector.broadcast %10 : vector<1x128xf32> to vector<128x128xf32>
    %12 = arith.addf %9, %11 : vector<128x128xf32>
    %cst_11 = arith.constant 0.000000e+00 : f32
    %13 = vector.broadcast %cst_11 : f32 to vector<128x128xf32>
    %14 = arith.maximumf %12, %13 : vector<128x128xf32>
    %c0_12 = arith.constant 0 : index
    %c0_13 = arith.constant 0 : index
    %15 = vector.load %arg7[%c0_12, %c0_13] : memref<128x128xf32, #tpu.memory_space<vmem>>, vector<128x128xf32>
    %cst_14 = arith.constant dense<0.000000e+00> : vector<128x128xf32>
    %16 = tpu.matmul %14, %15, %cst_14 {dimension_numbers = #tpu.dot_dimension_numbers<[1], [0], [0], [1], [0, 0, 1, 1], [], []>} : vector<128x128xf32>, vector<128x128xf32>, vector<128x128xf32> -> vector<128x128xf32>
    %c0_15 = arith.constant 0 : index
    %c0_16 = arith.constant 0 : index
    %17 = vector.load %arg8[%c0_15, %c0_16] : memref<1x128xf32, #tpu.memory_space<vmem>>, vector<1x128xf32>
    %18 = vector.broadcast %17 : vector<1x128xf32> to vector<128x128xf32>
    %19 = arith.addf %16, %18 : vector<128x128xf32>
    %cst_17 = arith.constant 0.000000e+00 : f32
    %20 = vector.broadcast %cst_17 : f32 to vector<128x128xf32>
    %21 = arith.maximumf %19, %20 : vector<128x128xf32>
    %c0_18 = arith.constant 0 : index
    %c0_19 = arith.constant 0 : index
    %22 = vector.load %arg9[%c0_18, %c0_19] : memref<128x128xf32, #tpu.memory_space<vmem>>, vector<128x128xf32>
    %cst_20 = arith.constant dense<0.000000e+00> : vector<128x128xf32>
    %23 = tpu.matmul %21, %22, %cst_20 {dimension_numbers = #tpu.dot_dimension_numbers<[1], [0], [0], [1], [0, 0, 1, 1], [], []>} : vector<128x128xf32>, vector<128x128xf32>, vector<128x128xf32> -> vector<128x128xf32>
    %c0_21 = arith.constant 0 : index
    %c0_22 = arith.constant 0 : index
    %24 = vector.load %arg10[%c0_21, %c0_22] : memref<1x128xf32, #tpu.memory_space<vmem>>, vector<1x128xf32>
    %25 = vector.broadcast %24 : vector<1x128xf32> to vector<128x128xf32>
    %26 = arith.addf %23, %25 : vector<128x128xf32>
    %cst_23 = arith.constant 0.000000e+00 : f32
    %27 = vector.broadcast %cst_23 : f32 to vector<128x128xf32>
    %28 = arith.cmpf ogt, %26, %27 : vector<128x128xf32>
    %cst_24 = arith.constant 0.00999999977 : f32
    %29 = vector.broadcast %cst_24 : f32 to vector<128x128xf32>
    %30 = arith.mulf %29, %26 : vector<128x128xf32>
    %31 = arith.select %28, %26, %30 : vector<128x128xi1>, vector<128x128xf32>
    %c0_25 = arith.constant 0 : index
    %c0_26 = arith.constant 0 : index
    %32 = vector.load %arg1[%c0_25, %c0_26] : memref<128x128xf32, #tpu.memory_space<vmem>>, vector<128x128xf32>
    %cst_27 = arith.constant 0.000000e+00 : f32
    %33 = vector.broadcast %cst_27 : f32 to vector<128x128xf32>
    %34 = arith.maximumf %31, %33 : vector<128x128xf32>
    %cst_28 = arith.constant dense<0.000000e+00> : vector<128x128xf32>
    %35 = tpu.matmul %32, %34, %cst_28 {dimension_numbers = #tpu.dot_dimension_numbers<[1], [0], [0], [1], [0, 0, 1, 1], [], []>} : vector<128x128xf32>, vector<128x128xf32>, vector<128x128xf32> -> vector<128x128xf32>
    %cst_29 = arith.constant 1.000000e+00 : f32
    %36 = vector.broadcast %cst_29 : f32 to vector<128x128xf32>
    %37 = arith.mulf %36, %31 : vector<128x128xf32>
    %38 = arith.addf %37, %35 : vector<128x128xf32>
    %c0_30 = arith.constant 0 : index
    %c0_31 = arith.constant 0 : index
    %39 = vector.load %arg11[%c0_30, %c0_31] : memref<128x128xf32, #tpu.memory_space<vmem>>, vector<128x128xf32>
    %cst_32 = arith.constant dense<0.000000e+00> : vector<128x128xf32>
    %40 = tpu.matmul %38, %39, %cst_32 {dimension_numbers = #tpu.dot_dimension_numbers<[1], [0], [0], [1], [0, 0, 1, 1], [], []>} : vector<128x128xf32>, vector<128x128xf32>, vector<128x128xf32> -> vector<128x128xf32>
    %c0_33 = arith.constant 0 : index
    %c0_34 = arith.constant 0 : index
    %41 = vector.load %arg12[%c0_33, %c0_34] : memref<1x128xf32, #tpu.memory_space<vmem>>, vector<1x128xf32>
    %42 = vector.broadcast %41 : vector<1x128xf32> to vector<128x128xf32>
    %43 = arith.addf %40, %42 : vector<128x128xf32>
    %cst_35 = arith.constant 0.000000e+00 : f32
    %44 = vector.broadcast %cst_35 : f32 to vector<128x128xf32>
    %45 = arith.maximumf %43, %44 : vector<128x128xf32>
    %c0_36 = arith.constant 0 : index
    %c0_37 = arith.constant 0 : index
    %46 = vector.load %arg13[%c0_36, %c0_37] : memref<128x128xf32, #tpu.memory_space<vmem>>, vector<128x128xf32>
    %cst_38 = arith.constant dense<0.000000e+00> : vector<128x128xf32>
    %47 = tpu.matmul %45, %46, %cst_38 {dimension_numbers = #tpu.dot_dimension_numbers<[1], [0], [0], [1], [0, 0, 1, 1], [], []>} : vector<128x128xf32>, vector<128x128xf32>, vector<128x128xf32> -> vector<128x128xf32>
    %c0_39 = arith.constant 0 : index
    %c0_40 = arith.constant 0 : index
    %48 = vector.load %arg14[%c0_39, %c0_40] : memref<1x128xf32, #tpu.memory_space<vmem>>, vector<1x128xf32>
    %49 = vector.broadcast %48 : vector<1x128xf32> to vector<128x128xf32>
    %50 = arith.addf %47, %49 : vector<128x128xf32>
    %cst_41 = arith.constant 0.000000e+00 : f32
    %51 = vector.broadcast %cst_41 : f32 to vector<128x128xf32>
    %52 = arith.cmpf ogt, %50, %51 : vector<128x128xf32>
    %cst_42 = arith.constant 0.00999999977 : f32
    %53 = vector.broadcast %cst_42 : f32 to vector<128x128xf32>
    %54 = arith.mulf %53, %50 : vector<128x128xf32>
    %55 = arith.select %52, %50, %54 : vector<128x128xi1>, vector<128x128xf32>
    %c0_43 = arith.constant 0 : index
    %c0_44 = arith.constant 0 : index
    %56 = vector.load %arg2[%c0_43, %c0_44] : memref<128x8xf32, #tpu.memory_space<vmem>>, vector<128x8xf32>
    %57 = vector.extract_strided_slice %56 {offsets = [0, 0], sizes = [128, 1], strides = [1, 1]} : vector<128x8xf32> to vector<128x1xf32>
    %cst_45 = arith.constant 0.000000e+00 : f32
    %58 = vector.broadcast %cst_45 : f32 to vector<128x1xf32>
    %59 = arith.cmpf ogt, %57, %58 : vector<128x1xf32>
    %cst_46 = arith.constant -1.000000e+30 : f32
    %60 = vector.shape_cast %59 : vector<128x1xi1> to vector<128x1xi1>
    %61 = vector.broadcast %60 : vector<128x1xi1> to vector<128x128xi1>
    %62 = vector.broadcast %cst_46 : f32 to vector<128x128xf32>
    %63 = arith.select %61, %55, %62 : vector<128x128xi1>, vector<128x128xf32>
    %cst_47 = arith.constant dense<0xFF800000> : vector<128xf32>
    %64 = vector.multi_reduction <maximumf>, %63, %cst_47 [0] : vector<128x128xf32> to vector<128xf32>
    %65 = vector.shape_cast %64 : vector<128xf32> to vector<1x128xf32>
    %66 = vector.extract_strided_slice %56 {offsets = [0, 1], sizes = [128, 1], strides = [1, 1]} : vector<128x8xf32> to vector<128x1xf32>
    %cst_48 = arith.constant 0.000000e+00 : f32
    %67 = vector.broadcast %cst_48 : f32 to vector<128x1xf32>
    %68 = arith.cmpf ogt, %66, %67 : vector<128x1xf32>
    %cst_49 = arith.constant -1.000000e+30 : f32
    %69 = vector.shape_cast %68 : vector<128x1xi1> to vector<128x1xi1>
    %70 = vector.broadcast %69 : vector<128x1xi1> to vector<128x128xi1>
    %71 = vector.broadcast %cst_49 : f32 to vector<128x128xf32>
    %72 = arith.select %70, %55, %71 : vector<128x128xi1>, vector<128x128xf32>
    %cst_50 = arith.constant dense<0xFF800000> : vector<128xf32>
    %73 = vector.multi_reduction <maximumf>, %72, %cst_50 [0] : vector<128x128xf32> to vector<128xf32>
    %74 = vector.shape_cast %73 : vector<128xf32> to vector<1x128xf32>
    %cst_51 = arith.constant 0.000000e+00 : f32
    %75 = vector.broadcast %cst_51 : f32 to vector<6x128xf32>
    %76 = tpu.concatenate %65, %74, %75 in 0 : vector<1x128xf32>, vector<1x128xf32>, vector<6x128xf32> -> vector<8x128xf32>
    %c0_52 = arith.constant 0 : index
    %c0_53 = arith.constant 0 : index
    %77 = vector.load %arg15[%c0_52, %c0_53] : memref<128x128xf32, #tpu.memory_space<vmem>>, vector<128x128xf32>
    %cst_54 = arith.constant dense<0.000000e+00> : vector<8x128xf32>
    %78 = tpu.matmul %76, %77, %cst_54 {dimension_numbers = #tpu.dot_dimension_numbers<[1], [0], [0], [1], [0, 0, 1, 1], [], []>} : vector<8x128xf32>, vector<128x128xf32>, vector<8x128xf32> -> vector<8x128xf32>
    %c0_55 = arith.constant 0 : index
    %c0_56 = arith.constant 0 : index
    %79 = vector.load %arg16[%c0_55, %c0_56] : memref<1x128xf32, #tpu.memory_space<vmem>>, vector<1x128xf32>
    %80 = vector.broadcast %79 : vector<1x128xf32> to vector<8x128xf32>
    %81 = arith.addf %78, %80 : vector<8x128xf32>
    %cst_57 = arith.constant 0.000000e+00 : f32
    %82 = vector.broadcast %cst_57 : f32 to vector<8x128xf32>
    %83 = arith.maximumf %81, %82 : vector<8x128xf32>
    %c0_58 = arith.constant 0 : index
    %c0_59 = arith.constant 0 : index
    %84 = vector.load %arg17[%c0_58, %c0_59] : memref<128x128xf32, #tpu.memory_space<vmem>>, vector<128x128xf32>
    %cst_60 = arith.constant dense<0.000000e+00> : vector<8x128xf32>
    %85 = tpu.matmul %83, %84, %cst_60 {dimension_numbers = #tpu.dot_dimension_numbers<[1], [0], [0], [1], [0, 0, 1, 1], [], []>} : vector<8x128xf32>, vector<128x128xf32>, vector<8x128xf32> -> vector<8x128xf32>
    %c0_61 = arith.constant 0 : index
    %c0_62 = arith.constant 0 : index
    %86 = vector.load %arg18[%c0_61, %c0_62] : memref<1x128xf32, #tpu.memory_space<vmem>>, vector<1x128xf32>
    %87 = vector.broadcast %86 : vector<1x128xf32> to vector<8x128xf32>
    %88 = arith.addf %85, %87 : vector<8x128xf32>
    %cst_63 = arith.constant 0.000000e+00 : f32
    %89 = vector.broadcast %cst_63 : f32 to vector<8x128xf32>
    %90 = arith.maximumf %88, %89 : vector<8x128xf32>
    %c0_64 = arith.constant 0 : index
    %c0_65 = arith.constant 0 : index
    %91 = vector.load %arg19[%c0_64, %c0_65] : memref<128x128xf32, #tpu.memory_space<vmem>>, vector<128x128xf32>
    %cst_66 = arith.constant dense<0.000000e+00> : vector<8x128xf32>
    %92 = tpu.matmul %90, %91, %cst_66 {dimension_numbers = #tpu.dot_dimension_numbers<[1], [0], [0], [1], [0, 0, 1, 1], [], []>} : vector<8x128xf32>, vector<128x128xf32>, vector<8x128xf32> -> vector<8x128xf32>
    %c0_67 = arith.constant 0 : index
    %c0_68 = arith.constant 0 : index
    %93 = vector.load %arg20[%c0_67, %c0_68] : memref<1x128xf32, #tpu.memory_space<vmem>>, vector<1x128xf32>
    %94 = vector.broadcast %93 : vector<1x128xf32> to vector<8x128xf32>
    %95 = arith.addf %92, %94 : vector<8x128xf32>
    %cst_69 = arith.constant 0.000000e+00 : f32
    %96 = vector.broadcast %cst_69 : f32 to vector<8x128xf32>
    %97 = arith.maximumf %95, %96 : vector<8x128xf32>
    %c0_70 = arith.constant 0 : index
    %c0_71 = arith.constant 0 : index
    %98 = vector.load %arg21[%c0_70, %c0_71] : memref<128x128xf32, #tpu.memory_space<vmem>>, vector<128x128xf32>
    %cst_72 = arith.constant dense<0.000000e+00> : vector<8x128xf32>
    %99 = tpu.matmul %97, %98, %cst_72 {dimension_numbers = #tpu.dot_dimension_numbers<[1], [0], [0], [1], [0, 0, 1, 1], [], []>} : vector<8x128xf32>, vector<128x128xf32>, vector<8x128xf32> -> vector<8x128xf32>
    %c0_73 = arith.constant 0 : index
    %c0_74 = arith.constant 0 : index
    %100 = vector.load %arg22[%c0_73, %c0_74] : memref<1x128xf32, #tpu.memory_space<vmem>>, vector<1x128xf32>
    %101 = vector.broadcast %100 : vector<1x128xf32> to vector<8x128xf32>
    %102 = arith.addf %99, %101 : vector<8x128xf32>
    %c0_75 = arith.constant 0 : index
    %c0_76 = arith.constant 0 : index
    %103 = vector.load %arg23[%c0_75, %c0_76] : memref<8x128xf32, #tpu.memory_space<vmem>>, vector<8x128xf32>
    tpu.vector_store %arg23[%c0_75, %c0_76], %102 {strides = array<i32>} : memref<8x128xf32, #tpu.memory_space<vmem>>, vector<8x128xf32>,
    return
  }
}

</mosaic_0001>

<bundles_post_ra>
// kernel: tpu_custom_call.1
= control target key start
LH: loop header
LB: loop body
LE: loop exit
PB: predicated region body
PF: predicated region fallthrough
CT: control target
= control target key end

     0   :  { %s2491_s0 = inlined_call_operand.vmem [shape: f32[128,128], index: 0, kind: input, shape index: {}]   ;;  %s2492_s1 = inlined_call_operand.hbm [shape: f32[128,128], index: 1, kind: input, shape index: {}]   ;;  %s2493_s2 = inlined_call_operand.vmem [shape: f32[128,8], index: 2, kind: input, shape index: {}]   ;;  %s2494_s3 = inlined_call_operand.hbm [shape: f32[128,128], index: 3, kind: input, shape index: {}]   ;;  %s2495_s4 = inlined_call_operand.vmem [shape: f32[1,128], index: 4, kind: input, shape index: {}]   ;;  %s2496_s5 = inlined_call_operand.hbm [shape: f32[128,128], index: 5, kind: input, shape index: {}]   ;;  %s2497_s6 = inlined_call_operand.vmem [shape: f32[1,128], index: 6, kind: input, shape index: {}]   ;;  %s2498_s7 = inlined_call_operand.hbm [shape: f32[128,128], index: 7, kind: input, shape index: {}]   ;;  %s2499_s8 = inlined_call_operand.vmem [shape: f32[1,128], index: 8, kind: input, shape index: {}]   ;;  %s2500_s9 = inlined_call_operand.hbm [shape: f32[128,128], index: 9, kind: input, shape index: {}]   ;;  %s2501_s10 = inlined_call_operand.vmem [shape: f32[1,128], index: 10, kind: input, shape index: {}]   ;;  %s2502_s11 = inlined_call_operand.hbm [shape: f32[128,128], index: 11, kind: input, shape index: {}]   ;;  %s2503_s12 = inlined_call_operand.vmem [shape: f32[1,128], index: 12, kind: input, shape index: {}]   ;;  %s2504_s13 = inlined_call_operand.hbm [shape: f32[128,128], index: 13, kind: input, shape index: {}]   ;;  %s2505_s14 = inlined_call_operand.vmem [shape: f32[1,128], index: 14, kind: input, shape index: {}]   ;;  %s2506_s15 = inlined_call_operand.hbm [shape: f32[128,128], index: 15, kind: input, shape index: {}]   ;;  %s2507_s16 = inlined_call_operand.vmem [shape: f32[1,128], index: 16, kind: input, shape index: {}]   ;;  %s2508_s17 = inlined_call_operand.hbm [shape: f32[128,128], index: 17, kind: input, shape index: {}]   ;;  %s2509_s18 = inlined_call_operand.vmem [shape: f32[1,128], index: 18, kind: input, shape index: {}]   ;;  %s2510_s19 = inlined_call_operand.hbm [shape: f32[128,128], index: 19, kind: input, shape index: {}]   ;;  %s2511_s20 = inlined_call_operand.vmem [shape: f32[1,128], index: 20, kind: input, shape index: {}]   ;;  %s2512_s21 = inlined_call_operand.hbm [shape: f32[128,128], index: 21, kind: input, shape index: {}]   ;;  %s2513_s22 = inlined_call_operand.vmem [shape: f32[1,128], index: 22, kind: input, shape index: {}]   ;;  %s2514_s23 = inlined_call_operand.hbm [shape: f32[8,128], index: 23, kind: output, shape index: {}]  }
   0x1   :  { %2517 = sst [smem:[#allocation28_spill]] %s2491_s0 }
   0x2   :  { %2518 = sst [smem:[#allocation29_spill]] %s2492_s1 }
   0x3   :  { %2519 = sst [smem:[#allocation30_spill]] %s2493_s2 }
   0x4   :  { %2520 = sst [smem:[#allocation31_spill]] %s2494_s3 }
   0x5   :  { %2521 = sst [smem:[#allocation32_spill]] %s2495_s4 }
   0x6   :  { %2522 = sst [smem:[#allocation33_spill]] %s2496_s5 }
   0x7   :  { %2523 = sst [smem:[#allocation34_spill]] %s2497_s6 }
   0x8   :  { %2524 = sst [smem:[#allocation35_spill]] %s2498_s7 }
   0x9   :  { %28 = vsyncpa [#allocation3], 0 }
   0xa   :  { %29 = vsyncpa [#allocation6], 0 }
   0xb   :  { %30 = vsyncpa [#allocation9], 0 }
   0xc   :  { %31 = vsyncpa [#allocation12], 0 }
   0xd   :  { %32 = vsyncpa [#allocation15], 0 }
   0xe   :  { %33 = vsyncpa [#allocation18], 0 }
   0xf   :  { %34 = vsyncpa [#allocation4], 0  ;;  %s2525_s24 = sld [smem:[#allocation31_spill]]  ;;  %s1829_s5 = smov [#allocation5]  }
  0x10   :  { %s58_s1 = sshll.u32 %s1829_s5, 4  ;;  %s2526_s6 = sld [smem:[#allocation35_spill]]  ;;  %s59_s1 = int_to_ptr.vmem [resolvable:$true] %s58_s1 }
  0x11   :  { %s1830_s7 = smov 128   ;;  %s1831_s28 = smov 8  }
  0x12   :  { %s1832_s29 = smov [#allocation8]   ;;  %s116_s30 = sshll.u32 %s2502_s11, 4  ;;  %s117_s30 = int_to_ptr.hbm [resolvable:$true] %s116_s30 }
  0x13   :  { %s88_s3 = sshll.u32 %s1832_s29, 4  ;;  %s146_s26 = sshll.u32 %s2506_s15, 4  ;;  %s89_s3 = int_to_ptr.vmem [resolvable:$true] %s88_s3  ;;  %s147_s26 = int_to_ptr.hbm [resolvable:$true] %s146_s26 }
  0x14   :  { %s1833_s2 = smov [#allocation11]   ;;  %s176_s0 = sshll.u32 %s2510_s19, 4  ;;  %s177_s0 = int_to_ptr.hbm [resolvable:$true] %s176_s0 }
  0x15   :  { %s56_s25 = sshll.u32 %s2525_s24, 4  ;;  %s1835_s24 = smov [#allocation17]   ;;  %s57_s25 = int_to_ptr.hbm [resolvable:$true] %s56_s25 }
  0x16   :  { %s86_s27 = sshll.u32 %s2526_s6, 4  ;;  %s118_s6 = sshll.u32 %s1833_s2, 4  ;;  %s87_s27 = int_to_ptr.hbm [resolvable:$true] %s86_s27  ;;  %s119_s6 = int_to_ptr.vmem [resolvable:$true] %s118_s6 }
  0x17   :  { %64 = dma.hbm_to_vmem [thread:$0]  %s57_s25, 2048, %s59_s1, [#allocation6], %s1830_s7, %s1830_s7, %s1831_s28  }
  0x18   :  { %94 = dma.hbm_to_vmem [thread:$0]  %s87_s27, 2048, %s89_s3, [#allocation9], %s1830_s7, %s1830_s7, %s1831_s28  }
  0x19   :  { %124 = dma.hbm_to_vmem [thread:$0]  %s117_s30, 2048, %s119_s6, [#allocation12], %s1830_s7, %s1830_s7, %s1831_s28  }
  0x1a   :  { %s1834_s25 = smov [#allocation14]   ;;  %s2527_s3 = sld [smem:[#allocation29_spill]] }
  0x1b   :  { %s148_s11 = sshll.u32 %s1834_s25, 4  ;;  %s178_s5 = sshll.u32 %s1835_s24, 4  ;;  %s149_s11 = int_to_ptr.vmem [resolvable:$true] %s148_s11  ;;  %s179_s5 = int_to_ptr.vmem [resolvable:$true] %s178_s5 }
  0x1c   :  { %154 = dma.hbm_to_vmem [thread:$0]  %s147_s26, 2048, %s149_s11, [#allocation15], %s1830_s7, %s1830_s7, %s1831_s28  }
  0x1d   :  { %184 = dma.hbm_to_vmem [thread:$0]  %s177_s0, 2048, %s179_s5, [#allocation18], %s1830_s7, %s1830_s7, %s1831_s28  }
  0x1e   :  { %s1836_s30 = smov [#allocation2]   ;;  %s2528_s25 = sld [smem:[#allocation33_spill]] }
  0x1f   :  { %s43_s19 = sshll.u32 %s1836_s30, 4  ;;  %s101_s29 = sshll.u32 %s2500_s9, 4  ;;  %s44_s19 = int_to_ptr.vmem [resolvable:$true] %s43_s19  ;;  %s102_s29 = int_to_ptr.hbm [resolvable:$true] %s101_s29 }
  0x20   :  { %s41_s4 = sshll.u32 %s2527_s3, 4  ;;  %s1837_s15 = smov [#allocation7]   ;;  %s42_s4 = int_to_ptr.hbm [resolvable:$true] %s41_s4 }
  0x21   :  { %49 = dma.hbm_to_vmem [thread:$0]  %s42_s4, 2048, %s44_s19, [#allocation3], %s1830_s7, %s1830_s7, %s1831_s28  }
  0x22   :  { %s73_s27 = sshll.u32 %s1837_s15, 4  ;;  %s1838_s0 = smov [#allocation10]   ;;  %s74_s27 = int_to_ptr.vmem [resolvable:$true] %s73_s27 }
  0x23   :  { %s103_s3 = sshll.u32 %s1838_s0, 4  ;;  %s131_s30 = sshll.u32 %s2504_s13, 4  ;;  %s104_s3 = int_to_ptr.vmem [resolvable:$true] %s103_s3  ;;  %s132_s30 = int_to_ptr.hbm [resolvable:$true] %s131_s30 }
  0x24   :  { %s71_s1 = sshll.u32 %s2528_s25, 4  ;;  %s161_s19 = sshll.u32 %s2508_s17, 4  ;;  %s72_s1 = int_to_ptr.hbm [resolvable:$true] %s71_s1  ;;  %s162_s19 = int_to_ptr.hbm [resolvable:$true] %s161_s19 }
  0x25   :  { %79 = dma.hbm_to_vmem [thread:$0]  %s72_s1, 2048, %s74_s27, [#allocation6], %s1830_s7, %s1830_s7, %s1831_s28  }
  0x26   :  { %109 = dma.hbm_to_vmem [thread:$0]  %s102_s29, 2048, %s104_s3, [#allocation9], %s1830_s7, %s1830_s7, %s1831_s28  }
  0x27   :  { %s1839_s2 = smov [#allocation13]   ;;  %s1840_s25 = smov [#allocation16]  }
  0x28   :  { %s133_s6 = sshll.u32 %s1839_s2, 4  ;;  %s163_s13 = sshll.u32 %s1840_s25, 4  ;;  %s134_s6 = int_to_ptr.vmem [resolvable:$true] %s133_s6  ;;  %s164_s13 = int_to_ptr.vmem [resolvable:$true] %s163_s13 }
  0x29   :  { %139 = dma.hbm_to_vmem [thread:$0]  %s132_s30, 2048, %s134_s6, [#allocation12], %s1830_s7, %s1830_s7, %s1831_s28  }
  0x2a   :  { %s191_s11 = sshll.u32 %s2512_s21, 4  ;;  %s1841_s17 = smov [#allocation19]   ;;  %s192_s11 = int_to_ptr.hbm [resolvable:$true] %s191_s11 }
  0x2b   :  { %169 = dma.hbm_to_vmem [thread:$0]  %s162_s19, 2048, %s164_s13, [#allocation15], %s1830_s7, %s1830_s7, %s1831_s28  }
  0x2c   :  { %s193_s29 = sshll.u32 %s1841_s17, 4  ;;  %s194_s29 = int_to_ptr.vmem [resolvable:$true] %s193_s29 }
  0x2d   :  { %199 = dma.hbm_to_vmem [thread:$0]  %s192_s11, 2048, %s194_s29, [#allocation18], %s1830_s7, %s1830_s7, %s1831_s28  }
  0x2e   :  { %1815 = dma.done.wait [#allocation3], 2048  }
  0x2f   :  { %1816 = vsyncadd [#allocation3], 4294965248 }
  0x30   :  { %1817 = dma.done.wait [#allocation6], 4096  }
  0x31   :  { %1818 = vsyncadd [#allocation6], 4294963200 }
  0x32   :  { %1819 = dma.done.wait [#allocation9], 4096  }
  0x33   :  { %1820 = vsyncadd [#allocation9], 4294963200 }
  0x34   :  { %1821 = dma.done.wait [#allocation12], 4096  }
  0x35   :  { %1822 = vsyncadd [#allocation12], 4294963200 }
  0x36   :  { %1823 = dma.done.wait [#allocation15], 4096  }
  0x37   :  { %1824 = vsyncadd [#allocation15], 4294963200 }
  0x38   :  { %1825 = dma.done.wait [#allocation18], 4096  }
  0x39   :  { %1826 = vsyncadd [#allocation18], 4294963200  ;;  %v277_v0 = vld [vmem:[#allocation5 + $0x78] sm:$0xff]  ;;  %v276_v1 = vld [vmem:[#allocation5 + $0x70] sm:$0xff]  ;;  %s2529_s28 = sld [smem:[#allocation28_spill]]  ;;  %s1470_s1 = sshll.u32 %s2514_s23, 4  ;;  %s1471_s1 = int_to_ptr.hbm [resolvable:$true] %s1470_s1 }
  0x3a   :  { %282 = vmatpush.msra.mxu0 %v277_v0  ;;  %v275_v2 = vld [vmem:[#allocation5 + $0x68] sm:$0xff]  ;;  %v274_v3 = vld [vmem:[#allocation5 + $0x60] sm:$0xff]  ;;  %v273_v4 = vld [vmem:[#allocation5 + $0x58] sm:$0xff]  ;;  %s2530_s6 = sld [smem:[#allocation32_spill]] }
  0x3b   :  { %v272_v5 = vld [vmem:[#allocation5 + $0x50] sm:$0xff]  ;;  %v271_v6 = vld [vmem:[#allocation5 + $0x48] sm:$0xff]  ;;  %v270_v7 = vld [vmem:[#allocation5 + $0x40] sm:$0xff]  ;;  %s2531_s13 = sld [smem:[#allocation34_spill]] }
  0x3c   :  { %283 = vmatpush.msra.mxu0 %v276_v1  ;;  %v269_v8 = vld [vmem:[#allocation5 + $0x38] sm:$0xff]  ;;  %v268_v9 = vld [vmem:[#allocation5 + $0x30] sm:$0xff]  ;;  %v267_v10 = vld [vmem:[#allocation5 + $0x28] sm:$0xff]  ;;  %s2532_s29 = sld [smem:[#allocation30_spill]] }
  0x3d   :  { %v266_v11 = vld [vmem:[#allocation5 + $0x20] sm:$0xff]  ;;  %v265_v12 = vld [vmem:[#allocation5 + $0x18] sm:$0xff]  ;;  %v264_v13 = vld [vmem:[#allocation5 + $0x10] sm:$0xff] }
  0x3e   :  { %284 = vmatpush.msra.mxu0 %v275_v2  ;;  %v263_v14 = vld [vmem:[#allocation5 + $0x8] sm:$0xff]  ;;  %v262_v15 = vld [vmem:[#allocation5] sm:$0xff]  ;;  %v378_v25 = vld [vmem:[#allocation7 + $0x78] sm:$0xff] }
  0x3f   :  { %v246_v16 = vld [vmem:[%s2529_s28] sm:$0xff]  ;;  %v247_v17 = vld [vmem:[%s2529_s28 + $0x8] sm:$0xff]  ;;  %v248_v18 = vld [vmem:[%s2529_s28 + $0x10] sm:$0xff]  ;;  %383 = vmatpush.msra.mxu1 %v378_v25 }
  0x40   :  { %285 = vmatpush.msra.mxu0 %v274_v3  ;;  %v249_v19 = vld [vmem:[%s2529_s28 + $0x18] sm:$0xff]  ;;  %v250_v20 = vld [vmem:[%s2529_s28 + $0x20] sm:$0xff]  ;;  %v251_v21 = vld [vmem:[%s2529_s28 + $0x28] sm:$0xff] }
  0x41   :  { %v252_v22 = vld [vmem:[%s2529_s28 + $0x30] sm:$0xff]  ;;  %v253_v23 = vld [vmem:[%s2529_s28 + $0x38] sm:$0xff]  ;;  %v254_v24 = vld [vmem:[%s2529_s28 + $0x40] sm:$0xff] }
  0x42   :  { %286 = vmatpush.msra.mxu0 %v273_v4  ;;  %v377_v26 = vld [vmem:[#allocation7 + $0x70] sm:$0xff]  ;;  %v376_v27 = vld [vmem:[#allocation7 + $0x68] sm:$0xff]  ;;  %v375_v29 = vld [vmem:[#allocation7 + $0x60] sm:$0xff] }
  0x43   :  { %384 = vmatpush.msra.mxu1 %v377_v26  ;;  %v255_v28 = vld [vmem:[%s2529_s28 + $0x48] sm:$0xff]  ;;  %v374_v30 = vld [vmem:[#allocation7 + $0x58] sm:$0xff]  ;;  %v373_v31 = vld [vmem:[#allocation7 + $0x50] sm:$0xff] }
  0x44   :  { %287 = vmatpush.msra.mxu0 %v272_v5  ;;  %v372_v32 = vld [vmem:[#allocation7 + $0x48] sm:$0xff]  ;;  %v256_v33 = vld [vmem:[%s2529_s28 + $0x50] sm:$0xff]  ;;  %v371_v34 = vld [vmem:[#allocation7 + $0x40] sm:$0xff] }
  0x45   :  { %385 = vmatpush.msra.mxu1 %v376_v27  ;;  %v370_v35 = vld [vmem:[#allocation7 + $0x38] sm:$0xff]  ;;  %v369_v36 = vld [vmem:[#allocation7 + $0x30] sm:$0xff]  ;;  %v368_v37 = vld [vmem:[#allocation7 + $0x28] sm:$0xff] }
  0x46   :  { %288 = vmatpush.msra.mxu0 %v271_v6  ;;  %v257_v38 = vld [vmem:[%s2529_s28 + $0x58] sm:$0xff]  ;;  %v367_v39 = vld [vmem:[#allocation7 + $0x20] sm:$0xff]  ;;  %v365_v41 = vld [vmem:[#allocation7 + $0x10] sm:$0xff] }
  0x47   :  { %386 = vmatpush.msra.mxu1 %v375_v29  ;;  %v366_v40 = vld [vmem:[#allocation7 + $0x18] sm:$0xff]  ;;  %v258_v42 = vld [vmem:[%s2529_s28 + $0x60] sm:$0xff]  ;;  %v364_v43 = vld [vmem:[#allocation7 + $0x8] sm:$0xff] }
  0x48   :  { %289 = vmatpush.msra.mxu0 %v270_v7  ;;  %v363_v44 = vld [vmem:[#allocation7] sm:$0xff]  ;;  %v259_v45 = vld [vmem:[%s2529_s28 + $0x68] sm:$0xff]  ;;  %v260_v46 = vld [vmem:[%s2529_s28 + $0x70] sm:$0xff] }
  0x49   :  { %387 = vmatpush.msra.mxu1 %v374_v30  ;;  %v261_v47 = vld [vmem:[%s2529_s28 + $0x78] sm:$0xff]  ;;  %v2082_v48 = vld [vmem:[%s2530_s6] ss:$0 sm:$0xff]  ;;  %v470_v29 = vld [vmem:[#allocation8 + $0x30] sm:$0xff]  ;;  %s1844_s28 = smov [#allocation20]  }
  0x4a   :  { %290 = vmatpush.msra.mxu0 %v269_v8  ;;  %v472_v25 = vld [vmem:[#allocation8 + $0x40] sm:$0xff]  ;;  %v471_v26 = vld [vmem:[#allocation8 + $0x38] sm:$0xff]  ;;  %s1468_s25 = sshll.u32 %s1844_s28, 4  ;;  %s1469_s25 = int_to_ptr.vmem [resolvable:$true] %s1468_s25 }
  0x4b   :  { %388 = vmatpush.msra.mxu1 %v373_v31  ;;  %v469_v31 = vld [vmem:[#allocation8 + $0x28] sm:$0xff] }
  0x4c   :  { %291 = vmatpush.msra.mxu0 %v268_v9 }
  0x4d   :  { %389 = vmatpush.msra.mxu1 %v372_v32  ;;  %v468_v32 = vld [vmem:[#allocation8 + $0x20] sm:$0xff] }
  0x4e   :  { %292 = vmatpush.msra.mxu0 %v267_v10 }
  0x4f   :  { %390 = vmatpush.msra.mxu1 %v371_v34 }
  0x50   :  { %293 = vmatpush.msra.mxu0 %v266_v11 }
  0x51   :  { %391 = vmatpush.msra.mxu1 %v370_v35 }
  0x52   :  { %294 = vmatpush.msra.mxu0 %v265_v12  ;;  %v479_v12 = vld [vmem:[#allocation8 + $0x78] sm:$0xff] }
  0x53   :  { %392 = vmatpush.msra.mxu1 %v369_v36  ;;  %484 = vmatpush.msra.mxu2 %v479_v12  ;;  %v466_v36 = vld [vmem:[#allocation8 + $0x10] sm:$0xff] }
  0x54   :  { %295 = vmatpush.msra.mxu0 %v264_v13 }
  0x55   :  { %393 = vmatpush.msra.mxu1 %v368_v37 }
  0x56   :  { %296 = vmatpush.msra.mxu0 %v263_v14 }
  0x57   :  { %394 = vmatpush.msra.mxu1 %v367_v39  ;;  %v464_v39 = vld [vmem:[#allocation8] sm:$0xff] }
  0x58   :  { %297 = vmatpush.msra.mxu0 %v262_v15  ;;  %v478_v15 = vld [vmem:[#allocation8 + $0x70] sm:$0xff] }
  0x59   :  { %298 = vmatmul.f32.vlgmr.msra.gmra.mxu0 %v246_v16  ;;  %395 = vmatpush.msra.mxu1 %v366_v40 }
  0x5a   :  { %485 = vmatpush.msra.mxu2 %v478_v15 }
  0x5b   :  { %396 = vmatpush.msra.mxu1 %v365_v41 }
  0x5d   :  { %397 = vmatpush.msra.mxu1 %v364_v43 }
  0x5f   :  { %398 = vmatpush.msra.mxu1 %v363_v44 }
  0x61   :  { %301 = vmatmul.f32.gmra.mxu0 %v247_v17  ;;  %v477_v17 = vld [vmem:[#allocation8 + $0x68] sm:$0xff] }
  0x62   :  { %486 = vmatpush.msra.mxu2 %v477_v17  ;;  %v579_v17 = vld [vmem:[#allocation10 + $0x70] sm:$0xff] }
  0x69   :  { %304 = vmatmul.f32.gmra.mxu0 %v248_v18  ;;  %v476_v18 = vld [vmem:[#allocation8 + $0x60] sm:$0xff] }
  0x6a   :  { %487 = vmatpush.msra.mxu2 %v476_v18 }
  0x71   :  { %307 = vmatmul.f32.gmra.mxu0 %v249_v19  ;;  %v475_v19 = vld [vmem:[#allocation8 + $0x58] sm:$0xff] }
  0x72   :  { %488 = vmatpush.msra.mxu2 %v475_v19 }
  0x79   :  { %310 = vmatmul.f32.gmra.mxu0 %v250_v20 }
  0x81   :  { %313 = vmatmul.f32.gmra.mxu0 %v251_v21 }
  0x89   :  { %316 = vmatmul.f32.gmra.mxu0 %v252_v22  ;;  %v474_v22 = vld [vmem:[#allocation8 + $0x50] sm:$0xff] }
  0x8a   :  { %489 = vmatpush.msra.mxu2 %v474_v22  ;;  %v577_v22 = vld [vmem:[#allocation10 + $0x60] sm:$0xff] }
  0x91   :  { %319 = vmatmul.f32.gmra.mxu0 %v253_v23 }
  0x99   :  { %322 = vmatmul.f32.gmra.mxu0 %v254_v24  ;;  %v473_v24 = vld [vmem:[#allocation8 + $0x48] sm:$0xff] }
  0x9a   :  { %490 = vmatpush.msra.mxu2 %v473_v24  ;;  %v575_v24 = vld [vmem:[#allocation10 + $0x50] sm:$0xff] }
  0x9c   :  { %491 = vmatpush.msra.mxu2 %v472_v25 }
  0x9e   :  { %492 = vmatpush.msra.mxu2 %v471_v26 }
  0xa0   :  { %493 = vmatpush.msra.mxu2 %v470_v29  ;;  %v573_v29 = vld [vmem:[#allocation10 + $0x40] sm:$0xff] }
  0xa1   :  { %325 = vmatmul.f32.gmra.mxu0 %v255_v28 }
  0xa2   :  { %494 = vmatpush.msra.mxu2 %v469_v31  ;;  %v571_v31 = vld [vmem:[#allocation10 + $0x30] sm:$0xff] }
  0xa4   :  { %495 = vmatpush.msra.mxu2 %v468_v32  ;;  %v570_v32 = vld [vmem:[#allocation10 + $0x28] sm:$0xff] }
  0xa9   :  { %328 = vmatmul.f32.gmra.mxu0 %v256_v33  ;;  %v467_v33 = vld [vmem:[#allocation8 + $0x18] sm:$0xff] }
  0xaa   :  { %496 = vmatpush.msra.mxu2 %v467_v33 }
  0xac   :  { %497 = vmatpush.msra.mxu2 %v466_v36 }
  0xb1   :  { %331 = vmatmul.f32.gmra.mxu0 %v257_v38  ;;  %v465_v38 = vld [vmem:[#allocation8 + $0x8] sm:$0xff] }
  0xb2   :  { %498 = vmatpush.msra.mxu2 %v465_v38  ;;  %v567_v38 = vld [vmem:[#allocation10 + $0x10] sm:$0xff] }
  0xb4   :  { %499 = vmatpush.msra.mxu2 %v464_v39 }
  0xb9   :  { %334 = vmatmul.f32.gmra.mxu0 %v258_v42 }
  0xc1   :  { %337 = vmatmul.f32.gmra.mxu0 %v259_v45 }
  0xc9   :  { %340 = vmatmul.f32.gmra.mxu0 %v260_v46 }
  0xd1   :  { %343 = vmatmul.f32.gmra.mxu0 %v261_v47 }
  0xd6   :  { %v299_v49 = vpop.f32.mrf.mxu0 }
  0xd7   :  { %v300_v50 = vadd.f32 %v2082_v48, %v299_v49 }
  0xd9   :  { %v347_v51 = vmax.f32 %v300_v50, 0.0  ;;  %v2103_v50 = vld [vmem:[%s2531_s13] ss:$0 sm:$0xff] }
  0xdb   :  { %399 = vmatmul.f32.vlgmr.msra.gmra.mxu1 %v347_v51 }
  0xde   :  { %v302_v52 = vpop.f32.mrf.mxu0 }
  0xdf   :  { %v303_v53 = vadd.f32 %v2082_v48, %v302_v52 }
  0xe1   :  { %v348_v54 = vmax.f32 %v303_v53, 0.0 }
  0xe3   :  { %402 = vmatmul.f32.gmra.mxu1 %v348_v54 }
  0xe6   :  { %v305_v55 = vpop.f32.mrf.mxu0 }
  0xe7   :  { %v306_v56 = vadd.f32 %v2082_v48, %v305_v55 }
  0xe9   :  { %v349_v57 = vmax.f32 %v306_v56, 0.0 }
  0xeb   :  { %405 = vmatmul.f32.gmra.mxu1 %v349_v57 }
  0xee   :  { %v308_v58 = vpop.f32.mrf.mxu0 }
  0xef   :  { %v309_v59 = vadd.f32 %v2082_v48, %v308_v58 }
  0xf1   :  { %v350_v60 = vmax.f32 %v309_v59, 0.0 }
  0xf3   :  { %408 = vmatmul.f32.gmra.mxu1 %v350_v60 }
  0xf6   :  { %v311_v61 = vpop.f32.mrf.mxu0 }
  0xf7   :  { %v312_v62 = vadd.f32 %v2082_v48, %v311_v61 }
  0xf9   :  { %v351_v63 = vmax.f32 %v312_v62, 0.0 }
  0xfb   :  { %411 = vmatmul.f32.gmra.mxu1 %v351_v63 }
  0xfe   :  { %v314_v0 = vpop.f32.mrf.mxu0 }
  0xff   :  { %v315_v1 = vadd.f32 %v2082_v48, %v314_v0 }
 0x101   :  { %v352_v2 = vmax.f32 %v315_v1, 0.0 }
 0x103   :  { %414 = vmatmul.f32.gmra.mxu1 %v352_v2 }
 0x106   :  { %v317_v3 = vpop.f32.mrf.mxu0 }
 0x107   :  { %v318_v4 = vadd.f32 %v2082_v48, %v317_v3 }
 0x109   :  { %v353_v5 = vmax.f32 %v318_v4, 0.0 }
 0x10b   :  { %417 = vmatmul.f32.gmra.mxu1 %v353_v5 }
 0x10e   :  { %v320_v6 = vpop.f32.mrf.mxu0 }
 0x10f   :  { %v321_v7 = vadd.f32 %v2082_v48, %v320_v6 }
 0x111   :  { %v354_v8 = vmax.f32 %v321_v7, 0.0 }
 0x113   :  { %420 = vmatmul.f32.gmra.mxu1 %v354_v8 }
 0x116   :  { %v323_v9 = vpop.f32.mrf.mxu0 }
 0x117   :  { %v324_v10 = vadd.f32 %v2082_v48, %v323_v9 }
 0x119   :  { %v355_v11 = vmax.f32 %v324_v10, 0.0 }
 0x11b   :  { %423 = vmatmul.f32.gmra.mxu1 %v355_v11 }
 0x11e   :  { %v326_v13 = vpop.f32.mrf.mxu0 }
 0x11f   :  { %v327_v14 = vadd.f32 %v2082_v48, %v326_v13 }
 0x121   :  { %v356_v16 = vmax.f32 %v327_v14, 0.0 }
 0x123   :  { %426 = vmatmul.f32.gmra.mxu1 %v356_v16  ;;  %v580_v16 = vld [vmem:[#allocation10 + $0x78] sm:$0xff] }
 0x124   :  { %585 = vmatpush.msra.mxu3 %v580_v16 }
 0x126   :  { %v329_v20 = vpop.f32.mrf.mxu0  ;;  %586 = vmatpush.msra.mxu3 %v579_v17 }
 0x127   :  { %v330_v21 = vadd.f32 %v2082_v48, %v329_v20  ;;  %v578_v20 = vld [vmem:[#allocation10 + $0x68] sm:$0xff] }
 0x128   :  { %587 = vmatpush.msra.mxu3 %v578_v20 }
 0x129   :  { %v357_v23 = vmax.f32 %v330_v21, 0.0 }
 0x12a   :  { %588 = vmatpush.msra.mxu3 %v577_v22 }
 0x12b   :  { %429 = vmatmul.f32.gmra.mxu1 %v357_v23  ;;  %v576_v23 = vld [vmem:[#allocation10 + $0x58] sm:$0xff] }
 0x12c   :  { %589 = vmatpush.msra.mxu3 %v576_v23 }
 0x12e   :  { %v332_v27 = vpop.f32.mrf.mxu0  ;;  %590 = vmatpush.msra.mxu3 %v575_v24 }
 0x12f   :  { %v333_v28 = vadd.f32 %v2082_v48, %v332_v27  ;;  %v574_v27 = vld [vmem:[#allocation10 + $0x48] sm:$0xff] }
 0x130   :  { %591 = vmatpush.msra.mxu3 %v574_v27 }
 0x131   :  { %v358_v30 = vmax.f32 %v333_v28, 0.0 }
 0x132   :  { %592 = vmatpush.msra.mxu3 %v573_v29 }
 0x133   :  { %432 = vmatmul.f32.gmra.mxu1 %v358_v30  ;;  %v572_v30 = vld [vmem:[#allocation10 + $0x38] sm:$0xff] }
 0x134   :  { %593 = vmatpush.msra.mxu3 %v572_v30 }
 0x136   :  { %v335_v34 = vpop.f32.mrf.mxu0  ;;  %594 = vmatpush.msra.mxu3 %v571_v31 }
 0x137   :  { %v336_v35 = vadd.f32 %v2082_v48, %v335_v34 }
 0x138   :  { %595 = vmatpush.msra.mxu3 %v570_v32 }
 0x139   :  { %v359_v37 = vmax.f32 %v336_v35, 0.0  ;;  %v569_v35 = vld [vmem:[#allocation10 + $0x20] sm:$0xff] }
 0x13a   :  { %596 = vmatpush.msra.mxu3 %v569_v35 }
 0x13b   :  { %435 = vmatmul.f32.gmra.mxu1 %v359_v37  ;;  %v568_v37 = vld [vmem:[#allocation10 + $0x18] sm:$0xff] }
 0x13c   :  { %597 = vmatpush.msra.mxu3 %v568_v37 }
 0x13e   :  { %v338_v40 = vpop.f32.mrf.mxu0  ;;  %598 = vmatpush.msra.mxu3 %v567_v38 }
 0x13f   :  { %v339_v41 = vadd.f32 %v2082_v48, %v338_v40 }
 0x141   :  { %v360_v42 = vmax.f32 %v339_v41, 0.0  ;;  %v566_v41 = vld [vmem:[#allocation10 + $0x8] sm:$0xff] }
 0x142   :  { %599 = vmatpush.msra.mxu3 %v566_v41 }
 0x143   :  { %438 = vmatmul.f32.gmra.mxu1 %v360_v42  ;;  %v565_v42 = vld [vmem:[#allocation10] sm:$0xff] }
 0x144   :  { %600 = vmatpush.msra.mxu3 %v565_v42 }
 0x146   :  { %v341_v43 = vpop.f32.mrf.mxu0 }
 0x147   :  { %v342_v44 = vadd.f32 %v2082_v48, %v341_v43 }
 0x149   :  { %v361_v45 = vmax.f32 %v342_v44, 0.0 }
 0x14b   :  { %441 = vmatmul.f32.gmra.mxu1 %v361_v45 }
 0x14e   :  { %v344_v46 = vpop.f32.mrf.mxu0 }
 0x14f   :  { %v345_v47 = vadd.f32 %v2082_v48, %v344_v46 }
 0x151   :  { %v362_v49 = vmax.f32 %v345_v47, 0.0 }
 0x153   :  { %444 = vmatmul.f32.gmra.mxu1 %v362_v49 }
 0x158   :  { %v400_v51 = vpop.f32.mrf.mxu1 }
 0x159   :  { %v401_v52 = vadd.f32 %v2103_v50, %v400_v51 }
 0x15b   :  { %v448_v53 = vmax.f32 %v401_v52, 0.0  ;;  %v1519_v52 = vld [vmem:[%s2499_s8] ss:$0 sm:$0xff] }
 0x15d   :  { %500 = vmatmul.f32.vlgmr.msra.gmra.mxu2 %v448_v53 }
 0x160   :  { %v403_v54 = vpop.f32.mrf.mxu1 }
 0x161   :  { %v404_v55 = vadd.f32 %v2103_v50, %v403_v54 }
 0x163   :  { %v449_v56 = vmax.f32 %v404_v55, 0.0 }
 0x165   :  { %503 = vmatmul.f32.gmra.mxu2 %v449_v56 }
 0x168   :  { %v406_v57 = vpop.f32.mrf.mxu1 }
 0x169   :  { %v407_v48 = vadd.f32 %v2103_v50, %v406_v57 }
 0x16b   :  { %v450_v58 = vmax.f32 %v407_v48, 0.0 }
 0x16d   :  { %506 = vmatmul.f32.gmra.mxu2 %v450_v58 }
 0x170   :  { %v409_v59 = vpop.f32.mrf.mxu1 }
 0x171   :  { %v410_v60 = vadd.f32 %v2103_v50, %v409_v59 }
 0x173   :  { %v451_v61 = vmax.f32 %v410_v60, 0.0 }
 0x175   :  { %509 = vmatmul.f32.gmra.mxu2 %v451_v61 }
 0x178   :  { %v412_v62 = vpop.f32.mrf.mxu1 }
 0x179   :  { %v413_v63 = vadd.f32 %v2103_v50, %v412_v62 }
 0x17b   :  { %v452_v0 = vmax.f32 %v413_v63, 0.0 }
 0x17d   :  { %512 = vmatmul.f32.gmra.mxu2 %v452_v0 }
 0x180   :  { %v415_v1 = vpop.f32.mrf.mxu1 }
 0x181   :  { %v416_v2 = vadd.f32 %v2103_v50, %v415_v1 }
 0x183   :  { %v453_v3 = vmax.f32 %v416_v2, 0.0 }
 0x185   :  { %515 = vmatmul.f32.gmra.mxu2 %v453_v3 }
 0x188   :  { %v418_v4 = vpop.f32.mrf.mxu1 }
 0x189   :  { %v419_v5 = vadd.f32 %v2103_v50, %v418_v4 }
 0x18b   :  { %v454_v6 = vmax.f32 %v419_v5, 0.0 }
 0x18d   :  { %518 = vmatmul.f32.gmra.mxu2 %v454_v6 }
 0x190   :  { %v421_v7 = vpop.f32.mrf.mxu1 }
 0x191   :  { %v422_v8 = vadd.f32 %v2103_v50, %v421_v7 }
 0x193   :  { %v455_v9 = vmax.f32 %v422_v8, 0.0 }
 0x195   :  { %521 = vmatmul.f32.gmra.mxu2 %v455_v9 }
 0x198   :  { %v424_v10 = vpop.f32.mrf.mxu1 }
 0x199   :  { %v425_v11 = vadd.f32 %v2103_v50, %v424_v10 }
 0x19b   :  { %v456_v12 = vmax.f32 %v425_v11, 0.0 }
 0x19d   :  { %524 = vmatmul.f32.gmra.mxu2 %v456_v12 }
 0x1a0   :  { %v427_v13 = vpop.f32.mrf.mxu1 }
 0x1a1   :  { %v428_v14 = vadd.f32 %v2103_v50, %v427_v13 }
 0x1a3   :  { %v457_v15 = vmax.f32 %v428_v14, 0.0 }
 0x1a5   :  { %527 = vmatmul.f32.gmra.mxu2 %v457_v15 }
 0x1a8   :  { %v430_v18 = vpop.f32.mrf.mxu1 }
 0x1a9   :  { %v431_v19 = vadd.f32 %v2103_v50, %v430_v18 }
 0x1ab   :  { %v458_v21 = vmax.f32 %v431_v19, 0.0 }
 0x1ad   :  { %530 = vmatmul.f32.gmra.mxu2 %v458_v21 }
 0x1b0   :  { %v433_v25 = vpop.f32.mrf.mxu1 }
 0x1b1   :  { %v434_v26 = vadd.f32 %v2103_v50, %v433_v25 }
 0x1b3   :  { %v459_v28 = vmax.f32 %v434_v26, 0.0 }
 0x1b5   :  { %533 = vmatmul.f32.gmra.mxu2 %v459_v28 }
 0x1b8   :  { %v436_v33 = vpop.f32.mrf.mxu1 }
 0x1b9   :  { %v437_v34 = vadd.f32 %v2103_v50, %v436_v33 }
 0x1bb   :  { %v460_v36 = vmax.f32 %v437_v34, 0.0 }
 0x1bd   :  { %536 = vmatmul.f32.gmra.mxu2 %v460_v36 }
 0x1c0   :  { %v439_v39 = vpop.f32.mrf.mxu1 }
 0x1c1   :  { %v440_v40 = vadd.f32 %v2103_v50, %v439_v39 }
 0x1c3   :  { %v461_v43 = vmax.f32 %v440_v40, 0.0 }
 0x1c5   :  { %539 = vmatmul.f32.gmra.mxu2 %v461_v43 }
 0x1c8   :  { %v442_v44 = vpop.f32.mrf.mxu1 }
 0x1c9   :  { %v443_v45 = vadd.f32 %v2103_v50, %v442_v44 }
 0x1cb   :  { %v462_v46 = vmax.f32 %v443_v45, 0.0 }
 0x1cd   :  { %542 = vmatmul.f32.gmra.mxu2 %v462_v46 }
 0x1d0   :  { %v445_v47 = vpop.f32.mrf.mxu1 }
 0x1d1   :  { %v446_v49 = vadd.f32 %v2103_v50, %v445_v47 }
 0x1d3   :  { %v463_v51 = vmax.f32 %v446_v49, 0.0 }
 0x1d5   :  { %545 = vmatmul.f32.gmra.mxu2 %v463_v51 }
 0x1e0   :  { %v501_v53 = vpop.f32.mrf.mxu2 }
 0x1e1   :  { %v502_v54 = vadd.f32 %v1519_v52, %v501_v53 }
 0x1e3   :  { %v549_v55 = vmax.f32 %v502_v54, 0.0 }
 0x1e5   :  { %601 = vmatmul.f32.vlgmr.msra.gmra.mxu3 %v549_v55 }
 0x1e8   :  { %v504_v56 = vpop.f32.mrf.mxu2 }
 0x1e9   :  { %v505_v57 = vadd.f32 %v1519_v52, %v504_v56 }
 0x1eb   :  { %v550_v48 = vmax.f32 %v505_v57, 0.0 }
 0x1ed   :  { %604 = vmatmul.f32.gmra.mxu3 %v550_v48 }
 0x1f0   :  { %v507_v58 = vpop.f32.mrf.mxu2 }
 0x1f1   :  { %v508_v59 = vadd.f32 %v1519_v52, %v507_v58 }
 0x1f3   :  { %v551_v60 = vmax.f32 %v508_v59, 0.0 }
 0x1f5   :  { %607 = vmatmul.f32.gmra.mxu3 %v551_v60 }
 0x1f8   :  { %v510_v61 = vpop.f32.mrf.mxu2 }
 0x1f9   :  { %v511_v50 = vadd.f32 %v1519_v52, %v510_v61 }
 0x1fb   :  { %v552_v62 = vmax.f32 %v511_v50, 0.0 }
 0x1fd   :  { %610 = vmatmul.f32.gmra.mxu3 %v552_v62 }
 0x200   :  { %v513_v63 = vpop.f32.mrf.mxu2 }
 0x201   :  { %v514_v0 = vadd.f32 %v1519_v52, %v513_v63 }
 0x203   :  { %v553_v1 = vmax.f32 %v514_v0, 0.0 }
 0x205   :  { %613 = vmatmul.f32.gmra.mxu3 %v553_v1 }
 0x208   :  { %v516_v2 = vpop.f32.mrf.mxu2 }
 0x209   :  { %v517_v3 = vadd.f32 %v1519_v52, %v516_v2 }
 0x20b   :  { %v554_v4 = vmax.f32 %v517_v3, 0.0 }
 0x20d   :  { %616 = vmatmul.f32.gmra.mxu3 %v554_v4 }
 0x210   :  { %v519_v5 = vpop.f32.mrf.mxu2 }
 0x211   :  { %v520_v6 = vadd.f32 %v1519_v52, %v519_v5 }
 0x213   :  { %v555_v7 = vmax.f32 %v520_v6, 0.0 }
 0x215   :  { %619 = vmatmul.f32.gmra.mxu3 %v555_v7 }
 0x218   :  { %v522_v8 = vpop.f32.mrf.mxu2 }
 0x219   :  { %v523_v9 = vadd.f32 %v1519_v52, %v522_v8 }
 0x21b   :  { %v556_v10 = vmax.f32 %v523_v9, 0.0 }
 0x21d   :  { %622 = vmatmul.f32.gmra.mxu3 %v556_v10 }
 0x220   :  { %v525_v11 = vpop.f32.mrf.mxu2 }
 0x221   :  { %v526_v12 = vadd.f32 %v1519_v52, %v525_v11 }
 0x223   :  { %v557_v13 = vmax.f32 %v526_v12, 0.0 }
 0x225   :  { %625 = vmatmul.f32.gmra.mxu3 %v557_v13 }
 0x228   :  { %v528_v14 = vpop.f32.mrf.mxu2 }
 0x229   :  { %v529_v15 = vadd.f32 %v1519_v52, %v528_v14 }
 0x22b   :  { %v558_v16 = vmax.f32 %v529_v15, 0.0 }
 0x22d   :  { %628 = vmatmul.f32.gmra.mxu3 %v558_v16 }
 0x230   :  { %v531_v17 = vpop.f32.mrf.mxu2 }
 0x231   :  { %v532_v18 = vadd.f32 %v1519_v52, %v531_v17 }
 0x233   :  { %v559_v19 = vmax.f32 %v532_v18, 0.0 }
 0x235   :  { %631 = vmatmul.f32.gmra.mxu3 %v559_v19 }
 0x238   :  { %v534_v20 = vpop.f32.mrf.mxu2 }
 0x239   :  { %v535_v21 = vadd.f32 %v1519_v52, %v534_v20 }
 0x23b   :  { %v560_v22 = vmax.f32 %v535_v21, 0.0 }
 0x23d   :  { %634 = vmatmul.f32.gmra.mxu3 %v560_v22 }
 0x240   :  { %v537_v23 = vpop.f32.mrf.mxu2 }
 0x241   :  { %v538_v24 = vadd.f32 %v1519_v52, %v537_v23 }
 0x243   :  { %v561_v25 = vmax.f32 %v538_v24, 0.0 }
 0x245   :  { %637 = vmatmul.f32.gmra.mxu3 %v561_v25 }
 0x248   :  { %v540_v26 = vpop.f32.mrf.mxu2 }
 0x249   :  { %v541_v27 = vadd.f32 %v1519_v52, %v540_v26 }
 0x24b   :  { %v562_v28 = vmax.f32 %v541_v27, 0.0 }
 0x24d   :  { %640 = vmatmul.f32.gmra.mxu3 %v562_v28 }
 0x250   :  { %v543_v29 = vpop.f32.mrf.mxu2 }
 0x251   :  { %v544_v30 = vadd.f32 %v1519_v52, %v543_v29 }
 0x253   :  { %v563_v31 = vmax.f32 %v544_v30, 0.0 }
 0x255   :  { %643 = vmatmul.f32.gmra.mxu3 %v563_v31 }
 0x258   :  { %v546_v32 = vpop.f32.mrf.mxu2 }
 0x259   :  { %v547_v33 = vadd.f32 %v1519_v52, %v546_v32  ;;  %v2135_v52 = vld [vmem:[%s2501_s10] ss:$0 sm:$0xff] }
 0x25b   :  { %v564_v34 = vmax.f32 %v547_v33, 0.0 }
 0x25d   :  { %646 = vmatmul.f32.gmra.mxu3 %v564_v34 }
 0x268   :  { %v2124_v35 = vpop.f32.mrf.mxu3 }
 0x270   :  { %v2126_v36 = vpop.f32.mrf.mxu3 }
 0x271   :  { %v606_v33 = vadd.f32 %v2135_v52, %v2126_v36 }
 0x273   :  { %vm651_vm14 = vcmp.gt.f32.partialorder %v606_v33, 0.0 }
 0x278   :  { %v2128_v37 = vpop.f32.mrf.mxu3 }
 0x279   :  { %v609_v29 = vadd.f32 %v2135_v52, %v2128_v37  ;;  %v603_v37 = vadd.f32 %v2135_v52, %v2124_v35 }
 0x27b   :  { %vm652_vm13 = vcmp.gt.f32.partialorder %v609_v29, 0.0  ;;  %vm650_vm15 = vcmp.gt.f32.partialorder %v603_v37, 0.0 }
 0x280   :  { %v2130_v38 = vpop.f32.mrf.mxu3 }
 0x281   :  { %v612_v25 = vadd.f32 %v2135_v52, %v2130_v38 }
 0x283   :  { %v669_v34 = vmul.f32 0.01, %v612_v25  ;;  %vm653_vm12 = vcmp.gt.f32.partialorder %v612_v25, 0.0 }
 0x288   :  { %v614_v39 = vpop.f32.mrf.mxu3 }
 0x289   :  { %v615_v21 = vadd.f32 %v2135_v52, %v614_v39 }
 0x28b   :  { %v670_v30 = vmul.f32 0.01, %v615_v21  ;;  %vm654_vm11 = vcmp.gt.f32.partialorder %v615_v21, 0.0 }
 0x290   :  { %v617_v40 = vpop.f32.mrf.mxu3 }
 0x291   :  { %v618_v17 = vadd.f32 %v2135_v52, %v617_v40  ;;  %v668_v40 = vmul.f32 0.01, %v609_v29 }
 0x293   :  { %v671_v26 = vmul.f32 0.01, %v618_v17  ;;  %vm655_vm10 = vcmp.gt.f32.partialorder %v618_v17, 0.0 }
 0x295   :  { %v2184_v38 = vsel %vm655_vm10, %v618_v17, %v671_v26  ;;  %v709_v17 = vld [vmem:[#allocation2 + $0x58] sm:$0xff]  ;;  %v712_v26 = vld [vmem:[#allocation2 + $0x70] sm:$0xff] }
 0x298   :  { %v620_v41 = vpop.f32.mrf.mxu3 }
 0x299   :  { %v621_v13 = vadd.f32 %v2135_v52, %v620_v41  ;;  %v2189_v41 = vsel %vm654_vm11, %v615_v21, %v670_v30  ;;  %v812_v21 = vld [vmem:[#allocation11 + $0x8] sm:$0xff] }
 0x29a   :  { %v718_v36 = vmax.f32 %v2189_v41, 0.0 }
 0x29b   :  { %v672_v22 = vmul.f32 0.01, %v621_v13  ;;  %vm656_vm9 = vcmp.gt.f32.partialorder %v621_v13, 0.0 }
 0x29d   :  { %v2179_v31 = vsel %vm656_vm9, %v621_v13, %v672_v22  ;;  %v817_v13 = vld [vmem:[#allocation11 + $0x30] sm:$0xff]  ;;  %v710_v22 = vld [vmem:[#allocation2 + $0x60] sm:$0xff] }
 0x29e   :  { %v720_v39 = vmax.f32 %v2179_v31, 0.0 }
 0x2a0   :  { %v623_v42 = vpop.f32.mrf.mxu3 }
 0x2a1   :  { %v624_v9 = vadd.f32 %v2135_v52, %v623_v42  ;;  %v719_v42 = vmax.f32 %v2184_v38, 0.0 }
 0x2a3   :  { %v673_v18 = vmul.f32 0.01, %v624_v9  ;;  %vm657_vm8 = vcmp.gt.f32.partialorder %v624_v9, 0.0 }
 0x2a5   :  { %v2174_v27 = vsel %vm657_vm8, %v624_v9, %v673_v18  ;;  %v819_v9 = vld [vmem:[#allocation11 + $0x40] sm:$0xff]  ;;  %v814_v18 = vld [vmem:[#allocation11 + $0x18] sm:$0xff] }
 0x2a6   :  { %v721_v32 = vmax.f32 %v2174_v27, 0.0 }
 0x2a8   :  { %v626_v43 = vpop.f32.mrf.mxu3 }
 0x2a9   :  { %v627_v5 = vadd.f32 %v2135_v52, %v626_v43  ;;  %v667_v43 = vmul.f32 0.01, %v606_v33 }
 0x2ab   :  { %v674_v14 = vmul.f32 0.01, %v627_v5  ;;  %vm658_vm7 = vcmp.gt.f32.partialorder %v627_v5, 0.0 }
 0x2ad   :  { %v2169_v23 = vsel %vm658_vm7, %v627_v5, %v674_v14  ;;  %v822_v5 = vld [vmem:[#allocation11 + $0x58] sm:$0xff]  ;;  %v816_v14 = vld [vmem:[#allocation11 + $0x28] sm:$0xff] }
 0x2ae   :  { %v722_v28 = vmax.f32 %v2169_v23, 0.0 }
 0x2b0   :  { %v629_v44 = vpop.f32.mrf.mxu3 }
 0x2b1   :  { %v630_v1 = vadd.f32 %v2135_v52, %v629_v44  ;;  %v2192_v44 = vsel %vm653_vm12, %v612_v25, %v669_v34  ;;  %v711_v25 = vld [vmem:[#allocation2 + $0x68] sm:$0xff] }
 0x2b2   :  { %v717_v35 = vmax.f32 %v2192_v44, 0.0 }
 0x2b3   :  { %v675_v10 = vmul.f32 0.01, %v630_v1  ;;  %vm659_vm6 = vcmp.gt.f32.partialorder %v630_v1, 0.0 }
 0x2b5   :  { %v2165_v19 = vsel %vm659_vm6, %v630_v1, %v675_v10  ;;  %v824_v1 = vld [vmem:[#allocation11 + $0x68] sm:$0xff]  ;;  %v708_v10 = vld [vmem:[#allocation2 + $0x50] sm:$0xff] }
 0x2b6   :  { %v723_v24 = vmax.f32 %v2165_v19, 0.0 }
 0x2b8   :  { %v632_v45 = vpop.f32.mrf.mxu3 }
 0x2b9   :  { %v633_v61 = vadd.f32 %v2135_v52, %v632_v45  ;;  %v666_v45 = vmul.f32 0.01, %v603_v37 }
 0x2bb   :  { %v676_v6 = vmul.f32 0.01, %v633_v61  ;;  %vm660_vm5 = vcmp.gt.f32.partialorder %v633_v61, 0.0 }
 0x2bd   :  { %v2161_v15 = vsel %vm660_vm5, %v633_v61, %v676_v6  ;;  %v706_v61 = vld [vmem:[#allocation2 + $0x40] sm:$0xff]  ;;  %v821_v6 = vld [vmem:[#allocation11 + $0x50] sm:$0xff] }
 0x2be   :  { %v724_v20 = vmax.f32 %v2161_v15, 0.0 }
 0x2c0   :  { %v635_v46 = vpop.f32.mrf.mxu3 }
 0x2c1   :  { %v636_v58 = vadd.f32 %v2135_v52, %v635_v46  ;;  %v2195_v46 = vsel %vm652_vm13, %v609_v29, %v668_v40 }
 0x2c3   :  { %v677_v2 = vmul.f32 0.01, %v636_v58  ;;  %vm661_vm4 = vcmp.gt.f32.partialorder %v636_v58, 0.0 }
 0x2c5   :  { %v2157_v11 = vsel %vm661_vm4, %v636_v58, %v677_v2  ;;  %v703_v58 = vld [vmem:[#allocation2 + $0x28] sm:$0xff]  ;;  %v823_v2 = vld [vmem:[#allocation11 + $0x60] sm:$0xff] }
 0x2c6   :  { %v725_v16 = vmax.f32 %v2157_v11, 0.0 }
 0x2c8   :  { %v638_v47 = vpop.f32.mrf.mxu3 }
 0x2c9   :  { %v639_v56 = vadd.f32 %v2135_v52, %v638_v47  ;;  %v2198_v47 = vsel %vm651_vm14, %v606_v33, %v667_v43 }
 0x2cb   :  { %v678_v50 = vmul.f32 0.01, %v639_v56  ;;  %vm662_vm3 = vcmp.gt.f32.partialorder %v639_v56, 0.0 }
 0x2cd   :  { %v2153_v7 = vsel %vm662_vm3, %v639_v56, %v678_v50  ;;  %v700_v56 = vld [vmem:[#allocation2 + $0x10] sm:$0xff]  ;;  %v826_v50 = vld [vmem:[#allocation11 + $0x78] sm:$0xff] }
 0x2ce   :  { %v726_v12 = vmax.f32 %v2153_v7, 0.0  ;;  %831 = vmatpush.msrb.mxu1 %v826_v50  ;;  %v916_v50 = vld [vmem:[#allocation13 + $0x20] sm:$0xff] }
 0x2d0   :  { %v641_v49 = vpop.f32.mrf.mxu3 }
 0x2d1   :  { %v642_v54 = vadd.f32 %v2135_v52, %v641_v49  ;;  %v716_v49 = vmax.f32 %v2195_v46, 0.0 }
 0x2d3   :  { %v679_v59 = vmul.f32 0.01, %v642_v54  ;;  %vm663_vm2 = vcmp.gt.f32.partialorder %v642_v54, 0.0 }
 0x2d5   :  { %v2149_v3 = vsel %vm663_vm2, %v642_v54, %v679_v59  ;;  %v698_v54 = vld [vmem:[#allocation2] sm:$0xff]  ;;  %v704_v59 = vld [vmem:[#allocation2 + $0x30] sm:$0xff] }
 0x2d6   :  { %v727_v8 = vmax.f32 %v2149_v3, 0.0 }
 0x2d8   :  { %v644_v51 = vpop.f32.mrf.mxu3 }
 0x2d9   :  { %v645_v53 = vadd.f32 %v2135_v52, %v644_v51  ;;  %v2201_v51 = vsel %vm650_vm15, %v603_v37, %v666_v45 }
 0x2db   :  { %v680_v57 = vmul.f32 0.01, %v645_v53  ;;  %vm664_vm0 = vcmp.gt.f32.partialorder %v645_v53, 0.0 }
 0x2dd   :  { %v2145_v63 = vsel %vm664_vm0, %v645_v53, %v680_v57  ;;  %v714_v53 = vmax.f32 %v2201_v51, 0.0  ;;  %v701_v57 = vld [vmem:[#allocation2 + $0x18] sm:$0xff] }
 0x2de   :  { %v728_v4 = vmax.f32 %v2145_v63, 0.0 }
 0x2e0   :  { %v647_v55 = vpop.f32.mrf.mxu3 }
 0x2e1   :  { %v648_v48 = vadd.f32 %v2135_v52, %v647_v55  ;;  %v715_v52 = vmax.f32 %v2198_v47, 0.0  ;;  %v699_v55 = vld [vmem:[#allocation2 + $0x8] sm:$0xff] }
 0x2e3   :  { %v681_v60 = vmul.f32 0.01, %v648_v48  ;;  %vm665_vm1 = vcmp.gt.f32.partialorder %v648_v48, 0.0 }
 0x2e5   :  { %v2143_v62 = vsel %vm665_vm1, %v648_v48, %v681_v60  ;;  %v702_v48 = vld [vmem:[#allocation2 + $0x20] sm:$0xff]  ;;  %v705_v60 = vld [vmem:[#allocation2 + $0x38] sm:$0xff] }
 0x2e6   :  { %v729_v0 = vmax.f32 %v2143_v62, 0.0 }
 0x2e8   :  { %730 = vmatpush.msrb.mxu0 %v729_v0  ;;  %v825_v0 = vld [vmem:[#allocation11 + $0x70] sm:$0xff] }
 0x2e9   :  { %832 = vmatpush.msrb.mxu1 %v825_v0  ;;  %v915_v0 = vld [vmem:[#allocation13 + $0x18] sm:$0xff] }
 0x2ea   :  { %731 = vmatpush.msrb.mxu0 %v728_v4  ;;  %v707_v4 = vld [vmem:[#allocation2 + $0x48] sm:$0xff] }
 0x2eb   :  { %833 = vmatpush.msrb.mxu1 %v824_v1  ;;  %v1842_v1 = vmov 1  }
 0x2ec   :  { %732 = vmatpush.msrb.mxu0 %v727_v8  ;;  %v820_v8 = vld [vmem:[#allocation11 + $0x48] sm:$0xff]  ;;  %1505 = vset.pattern.permute.xlu0 %v1842_v1 }
 0x2ed   :  { %834 = vmatpush.msrb.mxu1 %v823_v2  ;;  %v914_v2 = vld [vmem:[#allocation13 + $0x10] sm:$0xff] }
 0x2ee   :  { %733 = vmatpush.msrb.mxu0 %v726_v12  ;;  %v818_v12 = vld [vmem:[#allocation11 + $0x38] sm:$0xff] }
 0x2ef   :  { %835 = vmatpush.msrb.mxu1 %v822_v5  ;;  %v1843_v5 = vmov 0  }
 0x2f0   :  { %734 = vmatpush.msrb.mxu0 %v725_v16  ;;  %v815_v16 = vld [vmem:[#allocation11 + $0x20] sm:$0xff]  ;;  %1502 = vset.pattern.permute.xlu1 %v1843_v5 }
 0x2f1   :  { %836 = vmatpush.msrb.mxu1 %v821_v6  ;;  %1503 = vset.pattern.permute.xlu2 %v1843_v5 }
 0x2f2   :  { %735 = vmatpush.msrb.mxu0 %v724_v20  ;;  %v813_v20 = vld [vmem:[#allocation11 + $0x10] sm:$0xff] }
 0x2f3   :  { %837 = vmatpush.msrb.mxu1 %v820_v8  ;;  %v913_v8 = vld [vmem:[#allocation13 + $0x8] sm:$0xff] }
 0x2f4   :  { %736 = vmatpush.msrb.mxu0 %v723_v24  ;;  %v811_v24 = vld [vmem:[#allocation11] sm:$0xff] }
 0x2f5   :  { %838 = vmatpush.msrb.mxu1 %v819_v9  ;;  %v912_v9 = vld [vmem:[#allocation13] sm:$0xff] }
 0x2f6   :  { %737 = vmatpush.msrb.mxu0 %v722_v28  ;;  %v713_v28 = vld [vmem:[#allocation2 + $0x78] sm:$0xff] }
 0x2f7   :  { %839 = vmatpush.msrb.mxu1 %v818_v12 }
 0x2f8   :  { %738 = vmatpush.msrb.mxu0 %v721_v32 }
 0x2f9   :  { %840 = vmatpush.msrb.mxu1 %v817_v13 }
 0x2fa   :  { %739 = vmatpush.msrb.mxu0 %v720_v39 }
 0x2fb   :  { %841 = vmatpush.msrb.mxu1 %v816_v14 }
 0x2fc   :  { %740 = vmatpush.msrb.mxu0 %v719_v42 }
 0x2fd   :  { %842 = vmatpush.msrb.mxu1 %v815_v16  ;;  %v1055_v16 = vld [vmem:[%s2532_s29 + $0x50] sm:$0xff] }
 0x2fe   :  { %741 = vmatpush.msrb.mxu0 %v718_v36  ;;  %vm1071_vm3 = vcmp.gt.f32.partialorder %v1055_v16, 0.0 }
 0x2ff   :  { %843 = vmatpush.msrb.mxu1 %v814_v18 }
 0x300   :  { %742 = vmatpush.msrb.mxu0 %v717_v35 }
 0x301   :  { %844 = vmatpush.msrb.mxu1 %v813_v20  ;;  %v1087_v20 = vsel %vm1071_vm3, 1, %v1843_v5 }
 0x302   :  { %743 = vmatpush.msrb.mxu0 %v716_v49 }
 0x303   :  { %845 = vmatpush.msrb.mxu1 %v812_v21 }
 0x304   :  { %744 = vmatpush.msrb.mxu0 %v715_v52  ;;  %v927_v52 = vld [vmem:[#allocation13 + $0x78] sm:$0xff] }
 0x305   :  { %846 = vmatpush.msrb.mxu1 %v811_v24  ;;  %932 = vmatpush.msrb.mxu2 %v927_v52 }
 0x306   :  { %745 = vmatpush.msrb.mxu0 %v714_v53 }
 0x307   :  { %746 = vmatmul.f32.vlgmr.msrb.gmra.mxu0 %v698_v54  ;;  %v925_v54 = vld [vmem:[#allocation13 + $0x68] sm:$0xff] }
 0x30f   :  { %749 = vmatmul.f32.gmra.mxu0 %v699_v55  ;;  %v923_v55 = vld [vmem:[#allocation13 + $0x58] sm:$0xff] }
 0x317   :  { %752 = vmatmul.f32.gmra.mxu0 %v700_v56 }
 0x31f   :  { %755 = vmatmul.f32.gmra.mxu0 %v701_v57  ;;  %v921_v57 = vld [vmem:[#allocation13 + $0x48] sm:$0xff] }
 0x327   :  { %758 = vmatmul.f32.gmra.mxu0 %v702_v48  ;;  %v920_v48 = vld [vmem:[#allocation13 + $0x40] sm:$0xff] }
 0x32f   :  { %761 = vmatmul.f32.gmra.mxu0 %v703_v58  ;;  %v919_v58 = vld [vmem:[#allocation13 + $0x38] sm:$0xff] }
 0x337   :  { %764 = vmatmul.f32.gmra.mxu0 %v704_v59 }
 0x33f   :  { %767 = vmatmul.f32.gmra.mxu0 %v705_v60 }
 0x347   :  { %770 = vmatmul.f32.gmra.mxu0 %v706_v61  ;;  %v917_v61 = vld [vmem:[#allocation13 + $0x28] sm:$0xff] }
 0x34f   :  { %773 = vmatmul.f32.gmra.mxu0 %v707_v4 }
 0x357   :  { %776 = vmatmul.f32.gmra.mxu0 %v708_v10  ;;  %v1051_v10 = vld [vmem:[%s2532_s29 + $0x30] sm:$0xff] }
 0x358   :  { %vm1067_vm1 = vcmp.gt.f32.partialorder %v1051_v10, 0.0 }
 0x359   :  { %v1083_v13 = vsel %vm1067_vm1, 1, %v1843_v5 }
 0x35f   :  { %779 = vmatmul.f32.gmra.mxu0 %v709_v17 }
 0x367   :  { %782 = vmatmul.f32.gmra.mxu0 %v710_v22  ;;  %v1045_v22 = vld [vmem:[%s2532_s29] sm:$0xff] }
 0x368   :  { %vm1061_vm5 = vcmp.gt.f32.partialorder %v1045_v22, 0.0 }
 0x36f   :  { %785 = vmatmul.f32.gmra.mxu0 %v711_v25 }
 0x377   :  { %788 = vmatmul.f32.gmra.mxu0 %v712_v26 }
 0x37f   :  { %791 = vmatmul.f32.gmra.mxu0 %v713_v28  ;;  %v2252_v28 = vld [vmem:[%s2503_s12] ss:$0 sm:$0xff] }
 0x384   :  { %v747_v29 = vpop.f32.mrf.mxu0 }
 0x385   :  { %v795_v30 = vadd.f32 %v747_v29, %v2201_v51  ;;  %v1049_v29 = vld [vmem:[%s2532_s29 + $0x20] sm:$0xff] }
 0x386   :  { %vm1065_vm6 = vcmp.gt.f32.partialorder %v1049_v29, 0.0 }
 0x387   :  { %847 = vmatmul.f32.vlgmr.msrb.gmra.mxu1 %v795_v30 }
 0x38c   :  { %v750_v32 = vpop.f32.mrf.mxu0 }
 0x38d   :  { %v796_v33 = vadd.f32 %v750_v32, %v2198_v47  ;;  %v1081_v32 = vsel %vm1065_vm6, 1, %v1843_v5 }
 0x38e   :  { %1106 = vperm.xlu2 %1503, %v1081_v32  }
 0x38f   :  { %850 = vmatmul.f32.gmra.mxu1 %v796_v33 }
 0x394   :  { %v753_v34 = vpop.f32.mrf.mxu0 }
 0x395   :  { %v797_v39 = vadd.f32 %v753_v34, %v2195_v46 }
 0x397   :  { %853 = vmatmul.f32.gmra.mxu1 %v797_v39 }
 0x39c   :  { %v756_v37 = vpop.f32.mrf.mxu0 }
 0x39d   :  { %v798_v40 = vadd.f32 %v756_v37, %v2192_v44  ;;  %v1050_v37 = vld [vmem:[%s2532_s29 + $0x28] sm:$0xff] }
 0x39e   :  { %vm1066_vm8 = vcmp.gt.f32.partialorder %v1050_v37, 0.0 }
 0x39f   :  { %856 = vmatmul.f32.gmra.mxu1 %v798_v40 }
 0x3a4   :  { %v759_v42 = vpop.f32.mrf.mxu0 }
 0x3a5   :  { %v799_v43 = vadd.f32 %v759_v42, %v2189_v41  ;;  %v926_v41 = vld [vmem:[#allocation13 + $0x70] sm:$0xff]  ;;  %v1082_v42 = vsel %vm1066_vm8, 1, %v1843_v5 }
 0x3a6   :  { %933 = vmatpush.msrb.mxu2 %v926_v41  ;;  %1109 = vperm.xlu2 %1503, %v1082_v42  }
 0x3a7   :  { %859 = vmatmul.f32.gmra.mxu1 %v799_v43 }
 0x3a8   :  { %934 = vmatpush.msrb.mxu2 %v925_v54 }
 0x3ac   :  { %v762_v36 = vpop.f32.mrf.mxu0 }
 0x3ad   :  { %v800_v45 = vadd.f32 %v762_v36, %v2184_v38 }
 0x3ae   :  { %1504 = vset.pattern.permute.xlu2 %v1842_v1 }
 0x3af   :  { %862 = vmatmul.f32.gmra.mxu1 %v800_v45 }
 0x3b4   :  { %v765_v35 = vpop.f32.mrf.mxu0 }
 0x3b5   :  { %v801_v47 = vadd.f32 %v765_v35, %v2179_v31  ;;  %v924_v31 = vld [vmem:[#allocation13 + $0x60] sm:$0xff] }
 0x3b6   :  { %935 = vmatpush.msrb.mxu2 %v924_v31 }
 0x3b7   :  { %865 = vmatmul.f32.gmra.mxu1 %v801_v47 }
 0x3b8   :  { %936 = vmatpush.msrb.mxu2 %v923_v55 }
 0x3bc   :  { %v768_v49 = vpop.f32.mrf.mxu0 }
 0x3bd   :  { %v802_v46 = vadd.f32 %v768_v49, %v2174_v27  ;;  %v922_v27 = vld [vmem:[#allocation13 + $0x50] sm:$0xff] }
 0x3be   :  { %937 = vmatpush.msrb.mxu2 %v922_v27 }
 0x3bf   :  { %868 = vmatmul.f32.gmra.mxu1 %v802_v46 }
 0x3c0   :  { %938 = vmatpush.msrb.mxu2 %v921_v57 }
 0x3c2   :  { %939 = vmatpush.msrb.mxu2 %v920_v48 }
 0x3c4   :  { %v771_v51 = vpop.f32.mrf.mxu0  ;;  %940 = vmatpush.msrb.mxu2 %v919_v58 }
 0x3c5   :  { %v803_v44 = vadd.f32 %v771_v51, %v2169_v23 }
 0x3c7   :  { %871 = vmatmul.f32.gmra.mxu1 %v803_v44 }
 0x3cc   :  { %v774_v53 = vpop.f32.mrf.mxu0 }
 0x3cd   :  { %v804_v38 = vadd.f32 %v774_v53, %v2165_v19  ;;  %v918_v19 = vld [vmem:[#allocation13 + $0x30] sm:$0xff] }
 0x3ce   :  { %941 = vmatpush.msrb.mxu2 %v918_v19  ;;  %v1054_v19 = vld [vmem:[%s2532_s29 + $0x48] sm:$0xff] }
 0x3cf   :  { %874 = vmatmul.f32.gmra.mxu1 %v804_v38  ;;  %vm1070_vm10 = vcmp.gt.f32.partialorder %v1054_v19, 0.0 }
 0x3d0   :  { %942 = vmatpush.msrb.mxu2 %v917_v61  ;;  %v1086_v61 = vsel %vm1070_vm10, 1, %v1843_v5 }
 0x3d2   :  { %943 = vmatpush.msrb.mxu2 %v916_v50 }
 0x3d4   :  { %v777_v56 = vpop.f32.mrf.mxu0  ;;  %944 = vmatpush.msrb.mxu2 %v915_v0  ;;  %v1056_v0 = vld [vmem:[%s2532_s29 + $0x58] sm:$0xff] }
 0x3d5   :  { %v805_v23 = vadd.f32 %v777_v56, %v2161_v15  ;;  %v1046_v15 = vld [vmem:[%s2532_s29 + $0x8] sm:$0xff]  ;;  %v1053_v56 = vld [vmem:[%s2532_s29 + $0x40] sm:$0xff]  ;;  %vm1072_vm11 = vcmp.gt.f32.partialorder %v1056_v0, 0.0 }
 0x3d6   :  { %vm1062_vm0 = vcmp.gt.f32.partialorder %v1046_v15, 0.0  ;;  %945 = vmatpush.msrb.mxu2 %v914_v2  ;;  %vm1069_vm9 = vcmp.gt.f32.partialorder %v1053_v56, 0.0  ;;  %v1088_v15 = vsel %vm1072_vm11, 1, %v1843_v5 }
 0x3d7   :  { %877 = vmatmul.f32.gmra.mxu1 %v805_v23  ;;  %v1085_v48 = vsel %vm1069_vm9, 1, %v1843_v5 }
 0x3d8   :  { %946 = vmatpush.msrb.mxu2 %v913_v8  ;;  %v1060_v8 = vld [vmem:[%s2532_s29 + $0x78] sm:$0xff] }
 0x3d9   :  { %vm1076_vm13 = vcmp.gt.f32.partialorder %v1060_v8, 0.0 }
 0x3da   :  { %947 = vmatpush.msrb.mxu2 %v912_v9 }
 0x3dc   :  { %v780_v59 = vpop.f32.mrf.mxu0 }
 0x3dd   :  { %v806_v60 = vadd.f32 %v780_v59, %v2157_v11  ;;  %v1078_v11 = vsel %vm1062_vm0, 1, %v1843_v5 }
 0x3de   :  { %1198 = vperm.xlu0 %1505, %v1078_v11  }
 0x3df   :  { %880 = vmatmul.f32.gmra.mxu1 %v806_v60 }
 0x3e4   :  { %v783_v4 = vpop.f32.mrf.mxu0 }
 0x3e5   :  { %v807_v6 = vadd.f32 %v783_v4, %v2153_v7  ;;  %v1047_v7 = vld [vmem:[%s2532_s29 + $0x10] sm:$0xff] }
 0x3e6   :  { %1213 = vperm.xlu0 %1505, %v1083_v13   ;;  %vm1063_vm2 = vcmp.gt.f32.partialorder %v1047_v7, 0.0  ;;  %v1057_v7 = vld [vmem:[%s2532_s29 + $0x60] sm:$0xff] }
 0x3e7   :  { %883 = vmatmul.f32.gmra.mxu1 %v807_v6  ;;  %v1079_v18 = vsel %vm1063_vm2, 1, %v1843_v5  ;;  %v1058_v6 = vld [vmem:[%s2532_s29 + $0x68] sm:$0xff]  ;;  %vm1073_vm14 = vcmp.gt.f32.partialorder %v1057_v7, 0.0 }
 0x3e8   :  { %1100 = vperm.xlu1 %1502, %v1079_v18   ;;  %vm1074_vm12 = vcmp.gt.f32.partialorder %v1058_v6, 0.0 }
 0x3e9   :  { %v1090_v10 = vsel %vm1074_vm12, 1, %v1843_v5 }
 0x3ec   :  { %v786_v12 = vpop.f32.mrf.mxu0 }
 0x3ed   :  { %v808_v14 = vadd.f32 %v786_v12, %v2149_v3  ;;  %v1048_v3 = vld [vmem:[%s2532_s29 + $0x18] sm:$0xff] }
 0x3ee   :  { %1225 = vperm.xlu0 %1505, %v1087_v20   ;;  %vm1064_vm4 = vcmp.gt.f32.partialorder %v1048_v3, 0.0 }
 0x3ef   :  { %886 = vmatmul.f32.gmra.mxu1 %v808_v14  ;;  %v1080_v25 = vsel %vm1064_vm4, 1, %v1843_v5 }
 0x3f0   :  { %1103 = vperm.xlu1 %1502, %v1080_v25  }
 0x3f4   :  { %v789_v17 = vpop.f32.mrf.mxu0 }
 0x3f5   :  { %v809_v21 = vadd.f32 %v789_v17, %v2145_v63  ;;  %v1077_v63 = vsel %vm1061_vm5, 1, %v1843_v5 }
 0x3f6   :  { %1511 = vset.pattern.permute.xlu0 %v1843_v5  ;;  %1195 = vperm.xlu2 %1504, %v1077_v63  }
 0x3f7   :  { %889 = vmatmul.f32.gmra.mxu1 %v809_v21  ;;  %1094 = vperm.xlu0 %1511, %v1077_v63  }
 0x3fc   :  { %v792_v24 = vpop.f32.mrf.mxu0 }
 0x3fd   :  { %v810_v26 = vadd.f32 %v792_v24, %v2143_v62  ;;  %v1052_v62 = vld [vmem:[%s2532_s29 + $0x38] sm:$0xff]  ;;  %v1059_v24 = vld [vmem:[%s2532_s29 + $0x70] sm:$0xff] }
 0x3fe   :  { %vm1068_vm7 = vcmp.gt.f32.partialorder %v1052_v62, 0.0  ;;  %1204 = vperm.xlu2 %1504, %v1080_v25   ;;  %vm1075_vm15 = vcmp.gt.f32.partialorder %v1059_v24, 0.0 }
 0x3ff   :  { %892 = vmatmul.f32.gmra.mxu1 %v810_v26  ;;  %v1084_v33 = vsel %vm1068_vm7, 1, %v1843_v5  ;;  %1097 = vperm.xlu0 %1511, %v1078_v11   ;;  %v1091_v63 = vsel %vm1075_vm15, 1, %v1843_v5 }
 0x400   :  { %1115 = vperm.xlu1 %1502, %v1084_v33  }
 0x404   :  { %v848_v30 = vpop.f32.mrf.mxu1 }
 0x405   :  { %v849_v34 = vadd.f32 %v2252_v28, %v848_v30 }
 0x406   :  { %1210 = vperm.xlu2 %1504, %v1082_v42   ;;  %v2326_v42 = vld [vmem:[%s2505_s14] ss:$0 sm:$0xff] }
 0x407   :  { %v896_v39 = vmax.f32 %v849_v34, 0.0  ;;  %1112 = vperm.xlu0 %1511, %v1083_v13   ;;  %v1092_v13 = vsel %vm1076_vm13, 1, %v1843_v5 }
 0x408   :  { %1506 = vset.pattern.permute.xlu1 %v1842_v1 }
 0x409   :  { %948 = vmatmul.f32.vlgmr.msrb.gmra.mxu2 %v896_v39  ;;  %1201 = vperm.xlu1 %1506, %v1079_v18   ;;  %v1089_v18 = vsel %vm1073_vm14, 1, %v1843_v5 }
 0x40c   :  { %v851_v40 = vpop.f32.mrf.mxu1 }
 0x40d   :  { %v852_v43 = vadd.f32 %v2252_v28, %v851_v40 }
 0x40e   :  { %1507 = vset.pattern.permute.xlu2 %v1843_v5 }
 0x40f   :  { %v897_v36 = vmax.f32 %v852_v43, 0.0  ;;  %1118 = vperm.xlu2 %1507, %v1085_v48   ;;  %1121 = vperm.xlu0 %1511, %v1086_v61  }
 0x411   :  { %951 = vmatmul.f32.gmra.mxu2 %v897_v36  ;;  %1207 = vperm.xlu1 %1506, %v1081_v32  }
 0x414   :  { %v854_v45 = vpop.f32.mrf.mxu1 }
 0x415   :  { %v855_v35 = vadd.f32 %v2252_v28, %v854_v45 }
 0x417   :  { %v898_v47 = vmax.f32 %v855_v35, 0.0  ;;  %1127 = vperm.xlu2 %1507, %v1088_v15   ;;  %1139 = vperm.xlu0 %1511, %v1092_v13  }
 0x419   :  { %954 = vmatmul.f32.gmra.mxu2 %v898_v47  ;;  %1216 = vperm.xlu1 %1506, %v1084_v33   ;;  %v1107_v33 = vpop.permute.xlu2 %1106 }
 0x41a   :  { %vm1145_vm9 = vcmp.eq.s32.totalorder %v1107_v33, 1 }
 0x41c   :  { %v857_v49 = vpop.f32.mrf.mxu1 }
 0x41d   :  { %v858_v46 = vadd.f32 %v2252_v28, %v857_v49 }
 0x41f   :  { %v899_v51 = vmax.f32 %v858_v46, 0.0  ;;  %1510 = vset.pattern.permute.xlu2 %v1842_v1  ;;  %1516 = vset.pattern.permute.xlu0 %v1842_v1 }
 0x420   :  { %1222 = vperm.xlu2 %1510, %v1086_v61  }
 0x421   :  { %957 = vmatmul.f32.gmra.mxu2 %v899_v51  ;;  %1508 = vset.pattern.permute.xlu1 %v1843_v5 }
 0x422   :  { %1124 = vperm.xlu1 %1508, %v1087_v20  }
 0x424   :  { %v860_v44 = vpop.f32.mrf.mxu1 }
 0x425   :  { %v861_v52 = vadd.f32 %v2252_v28, %v860_v44 }
 0x427   :  { %v900_v41 = vmax.f32 %v861_v52, 0.0 }
 0x428   :  { %1512 = vset.pattern.permute.xlu2 %v1843_v5 }
 0x429   :  { %960 = vmatmul.f32.gmra.mxu2 %v900_v41  ;;  %1130 = vperm.xlu2 %1512, %v1089_v18  }
 0x42a   :  { %1509 = vset.pattern.permute.xlu1 %v1842_v1 }
 0x42b   :  { %1219 = vperm.xlu1 %1509, %v1085_v48  }
 0x42c   :  { %v863_v53 = vpop.f32.mrf.mxu1 }
 0x42d   :  { %v864_v38 = vadd.f32 %v2252_v28, %v863_v53 }
 0x42f   :  { %v901_v54 = vmax.f32 %v864_v38, 0.0 }
 0x431   :  { %963 = vmatmul.f32.gmra.mxu2 %v901_v54  ;;  %1136 = vperm.xlu2 %1512, %v1091_v63  }
 0x433   :  { %1228 = vperm.xlu1 %1509, %v1088_v15  }
 0x434   :  { %v866_v31 = vpop.f32.mrf.mxu1 }
 0x435   :  { %v867_v55 = vadd.f32 %v2252_v28, %v866_v31 }
 0x437   :  { %v902_v27 = vmax.f32 %v867_v55, 0.0 }
 0x439   :  { %966 = vmatmul.f32.gmra.mxu2 %v902_v27  ;;  %1515 = vset.pattern.permute.xlu2 %v1842_v1 }
 0x43a   :  { %1234 = vperm.xlu2 %1515, %v1090_v10  }
 0x43b   :  { %1513 = vset.pattern.permute.xlu1 %v1843_v5  ;;  %v2321_v5 = vpop.permute.xlu2 %1109 }
 0x43c   :  { %v869_v23 = vpop.f32.mrf.mxu1  ;;  %1133 = vperm.xlu1 %1513, %v1090_v10   ;;  %vm1146_vm15 = vcmp.eq.s32.totalorder %v2321_v5, 1 }
 0x43d   :  { %v870_v57 = vadd.f32 %v2252_v28, %v869_v23 }
 0x43f   :  { %v903_v58 = vmax.f32 %v870_v57, 0.0 }
 0x441   :  { %969 = vmatmul.f32.gmra.mxu2 %v903_v58 }
 0x442   :  { %1240 = vperm.xlu2 %1515, %v1092_v13  }
 0x444   :  { %v872_v59 = vpop.f32.mrf.mxu1  ;;  %1514 = vset.pattern.permute.xlu1 %v1842_v1 }
 0x445   :  { %v873_v60 = vadd.f32 %v2252_v28, %v872_v59  ;;  %1231 = vperm.xlu1 %1514, %v1089_v18  }
 0x447   :  { %v904_v50 = vmax.f32 %v873_v60, 0.0 }
 0x449   :  { %972 = vmatmul.f32.gmra.mxu2 %v904_v50 }
 0x44c   :  { %v875_v2 = vpop.f32.mrf.mxu1 }
 0x44d   :  { %v876_v4 = vadd.f32 %v2252_v28, %v875_v2  ;;  %1237 = vperm.xlu1 %1514, %v1091_v63  }
 0x44f   :  { %v905_v11 = vmax.f32 %v876_v4, 0.0 }
 0x450   :  { %v2328_v43 = vpop.permute.xlu0 %1198  ;;  %v1196_v36 = vpop.permute.xlu2 %1195 }
 0x451   :  { %975 = vmatmul.f32.gmra.mxu2 %v905_v11  ;;  %vm1242_vm1 = vcmp.eq.s32.totalorder %v1196_v36, 1  ;;  %vm1243_vm12 = vcmp.eq.s32.totalorder %v2328_v43, 1 }
 0x454   :  { %v878_v9 = vpop.f32.mrf.mxu1 }
 0x455   :  { %v879_v12 = vadd.f32 %v2252_v28, %v878_v9 }
 0x457   :  { %v906_v14 = vmax.f32 %v879_v12, 0.0 }
 0x458   :  { %v2333_v51 = vpop.permute.xlu0 %1213  ;;  %v2348_v19 = vpop.permute.xlu2 %1204 }
 0x459   :  { %978 = vmatmul.f32.gmra.mxu2 %v906_v14 }
 0x45a   :  { %v1101_v40 = vpop.permute.xlu1 %1100 }
 0x45b   :  { %vm1143_vm2 = vcmp.eq.s32.totalorder %v1101_v40, 1 }
 0x45c   :  { %v881_v16 = vpop.f32.mrf.mxu1 }
 0x45d   :  { %v882_v17 = vadd.f32 %v2252_v28, %v881_v16 }
 0x45f   :  { %v907_v20 = vmax.f32 %v882_v17, 0.0 }
 0x460   :  { %v2338_v53 = vpop.permute.xlu0 %1225  ;;  %v1211_v13 = vpop.permute.xlu2 %1210 }
 0x461   :  { %981 = vmatmul.f32.gmra.mxu2 %v907_v20  ;;  %vm1247_vm14 = vcmp.eq.s32.totalorder %v1211_v13, 1 }
 0x464   :  { %v884_v21 = vpop.f32.mrf.mxu1 }
 0x465   :  { %v885_v3 = vadd.f32 %v2252_v28, %v884_v21 }
 0x467   :  { %v908_v22 = vmax.f32 %v885_v3, 0.0 }
 0x469   :  { %984 = vmatmul.f32.gmra.mxu2 %v908_v22  ;;  %v1095_v57 = vpop.permute.xlu0 %1094  ;;  %v2391_v40 = vpop.permute.xlu2 %1118 }
 0x46a   :  { %vm1141_vm6 = vcmp.eq.s32.totalorder %v1095_v57, 1  ;;  %v1311_v57 = vld [vmem:[#allocation14 + $0x60] sm:$0xff] }
 0x46c   :  { %v887_v25 = vpop.f32.mrf.mxu1 }
 0x46d   :  { %v888_v26 = vadd.f32 %v2252_v28, %v887_v25 }
 0x46f   :  { %v909_v29 = vmax.f32 %v888_v26, 0.0 }
 0x471   :  { %987 = vmatmul.f32.gmra.mxu2 %v909_v29  ;;  %v1098_v8 = vpop.permute.xlu0 %1097 }
 0x472   :  { %vm1142_vm11 = vcmp.eq.s32.totalorder %v1098_v8, 1 }
 0x474   :  { %v890_v62 = vpop.f32.mrf.mxu1 }
 0x475   :  { %v891_v30 = vadd.f32 %v2252_v28, %v890_v62 }
 0x477   :  { %v910_v32 = vmax.f32 %v891_v30, 0.0 }
 0x479   :  { %990 = vmatmul.f32.gmra.mxu2 %v910_v32  ;;  %v1113_v26 = vpop.permute.xlu0 %1112 }
 0x47c   :  { %v893_v34 = vpop.f32.mrf.mxu1 }
 0x47d   :  { %v894_v39 = vadd.f32 %v2252_v28, %v893_v34  ;;  %v1104_v28 = vpop.permute.xlu1 %1103 }
 0x47e   :  { %vm1144_vm4 = vcmp.eq.s32.totalorder %v1104_v28, 1 }
 0x47f   :  { %v911_v37 = vmax.f32 %v894_v39, 0.0 }
 0x481   :  { %993 = vmatmul.f32.gmra.mxu2 %v911_v37 }
 0x485   :  { %v2335_v44 = vpop.permute.xlu1 %1115 }
 0x48c   :  { %v949_v1 = vpop.f32.mrf.mxu2 }
 0x48d   :  { %v950_v45 = vadd.f32 %v2326_v42, %v949_v1  ;;  %v1202_v55 = vpop.permute.xlu1 %1201 }
 0x48f   :  { %v1013_v35 = vmul.f32 0.01, %v950_v45  ;;  %vm997_vm0 = vcmp.gt.f32.partialorder %v950_v45, 0.0 }
 0x491   :  { %v1029_v47 = vsel %vm997_vm0, %v950_v45, %v1013_v35  ;;  %vm1248_vm0 = vcmp.eq.s32.totalorder %v2333_v51, 1 }
 0x492   :  { %v2331_v49 = vsel %vm1242_vm1, %v1029_v47, -1e+30  ;;  %v2352_v15 = vsel %vm1141_vm6, %v1029_v47, -1e+30  ;;  %vm1244_vm1 = vcmp.eq.s32.totalorder %v1202_v55, 1 }
 0x494   :  { %v952_v46 = vpop.f32.mrf.mxu2 }
 0x495   :  { %v1208_v60 = vpop.permute.xlu1 %1207  ;;  %v953_v50 = vadd.f32 %v2326_v42, %v952_v46  ;;  %v2404_v46 = vpop.permute.xlu2 %1127 }
 0x496   :  { %vm1246_vm8 = vcmp.eq.s32.totalorder %v1208_v60, 1 }
 0x497   :  { %v1014_v4 = vmul.f32 0.01, %v953_v50  ;;  %vm998_vm10 = vcmp.gt.f32.partialorder %v953_v50, 0.0 }
 0x499   :  { %v1030_v7 = vsel %vm998_vm10, %v953_v50, %v1014_v4 }
 0x49a   :  { %v2365_v17 = vsel %vm1142_vm11, %v1030_v7, -1e+30  ;;  %v2369_v21 = vsel %vm1243_vm12, %v1030_v7, -1e+30  ;;  %v1306_v7 = vld [vmem:[#allocation14 + $0x38] sm:$0xff] }
 0x49c   :  { %v955_v52 = vpop.f32.mrf.mxu2 }
 0x49d   :  { %v956_v41 = vadd.f32 %v2326_v42, %v955_v52  ;;  %v2379_v62 = vpop.permute.xlu1 %1216 }
 0x49f   :  { %v1015_v38 = vmul.f32 0.01, %v956_v41  ;;  %vm999_vm3 = vcmp.gt.f32.partialorder %v956_v41, 0.0 }
 0x4a1   :  { %v1031_v54 = vsel %vm999_vm3, %v956_v41, %v1015_v38  ;;  %vm1147_vm3 = vcmp.eq.s32.totalorder %v1113_v26, 1  ;;  %v1223_v41 = vpop.permute.xlu2 %1222 }
 0x4a2   :  { %v2340_v31 = vsel %vm1143_vm2, %v1031_v54, -1e+30  ;;  %v2381_v32 = vsel %vm1244_vm1, %v1031_v54, -1e+30  ;;  %vm1251_vm12 = vcmp.eq.s32.totalorder %v1223_v41, 1  ;;  %v1301_v41 = vld [vmem:[#allocation14 + $0x10] sm:$0xff] }
 0x4a4   :  { %v958_v27 = vpop.f32.mrf.mxu2 }
 0x4a5   :  { %v959_v56 = vadd.f32 %v2326_v42, %v958_v27  ;;  %v2400_v35 = vpop.permute.xlu1 %1124  ;;  %v1313_v27 = vld [vmem:[#allocation14 + $0x70] sm:$0xff] }
 0x4a7   :  { %v1016_v23 = vmul.f32 0.01, %v959_v56  ;;  %vm1000_vm5 = vcmp.gt.f32.partialorder %v959_v56, 0.0 }
 0x4a9   :  { %v2343_v48 = vsel %vm1000_vm5, %v959_v56, %v1016_v23  ;;  %vm1148_vm5 = vcmp.eq.s32.totalorder %v2335_v44, 1  ;;  %v1314_v44 = vld [vmem:[#allocation14 + $0x78] sm:$0xff]  ;;  %v2410_v55 = vpop.permute.xlu2 %1130  ;;  %v1312_v56 = vld [vmem:[#allocation14 + $0x68] sm:$0xff] }
 0x4aa   :  { %v2346_v58 = vsel %vm1144_vm4, %v2343_v48, -1e+30  ;;  %1319 = vmatpush.msrb.mxu3 %v1314_v44 }
 0x4ac   :  { %v961_v59 = vpop.f32.mrf.mxu2  ;;  %1320 = vmatpush.msrb.mxu3 %v1313_v27 }
 0x4ad   :  { %v962_v61 = vadd.f32 %v2326_v42, %v961_v59  ;;  %v1220_v52 = vpop.permute.xlu1 %1219  ;;  %v1310_v59 = vld [vmem:[#allocation14 + $0x58] sm:$0xff] }
 0x4ae   :  { %1321 = vmatpush.msrb.mxu3 %v1312_v56 }
 0x4af   :  { %v1017_v0 = vmul.f32 0.01, %v962_v61  ;;  %vm1001_vm7 = vcmp.gt.f32.partialorder %v962_v61, 0.0 }
 0x4b0   :  { %1322 = vmatpush.msrb.mxu3 %v1311_v57  ;;  %v1302_v57 = vld [vmem:[#allocation14 + $0x18] sm:$0xff] }
 0x4b1   :  { %v1033_v2 = vsel %vm1001_vm7, %v962_v61, %v1017_v0  ;;  %v1309_v61 = vld [vmem:[#allocation14 + $0x50] sm:$0xff]  ;;  %v2417_v0 = vpop.permute.xlu2 %1136 }
 0x4b2   :  { %v2354_v11 = vsel %vm1145_vm9, %v1033_v2, -1e+30  ;;  %v2356_v6 = vsel %vm1246_vm8, %v1033_v2, -1e+30  ;;  %1323 = vmatpush.msrb.mxu3 %v1310_v59  ;;  %v1308_v2 = vld [vmem:[#allocation14 + $0x48] sm:$0xff]  ;;  %vm1149_vm8 = vcmp.eq.s32.totalorder %v2391_v40, 1 }
 0x4b3   :  { %v1173_v9 = vmax.f32 %v2352_v15, %v2354_v11  ;;  %v1274_v10 = vmax.f32 %v2331_v49, %v2356_v6  ;;  %vm1250_vm9 = vcmp.eq.s32.totalorder %v1220_v52, 1 }
 0x4b4   :  { %v964_v12 = vpop.f32.mrf.mxu2  ;;  %1324 = vmatpush.msrb.mxu3 %v1309_v61 }
 0x4b5   :  { %v965_v14 = vadd.f32 %v2326_v42, %v964_v12  ;;  %v2408_v54 = vpop.permute.xlu1 %1228  ;;  %v1307_v12 = vld [vmem:[#allocation14 + $0x40] sm:$0xff] }
 0x4b6   :  { %1325 = vmatpush.msrb.mxu3 %v1308_v2 }
 0x4b7   :  { %v1018_v16 = vmul.f32 0.01, %v965_v14  ;;  %vm1002_vm13 = vcmp.gt.f32.partialorder %v965_v14, 0.0 }
 0x4b8   :  { %1326 = vmatpush.msrb.mxu3 %v1307_v12 }
 0x4b9   :  { %v1034_v18 = vsel %vm1002_vm13, %v965_v14, %v1018_v16  ;;  %vm1153_vm13 = vcmp.eq.s32.totalorder %v2410_v55, 1 }
 0x4ba   :  { %v2367_v20 = vsel %vm1146_vm15, %v1034_v18, -1e+30  ;;  %v2371_v3 = vsel %vm1247_vm14, %v1034_v18, -1e+30  ;;  %1327 = vmatpush.msrb.mxu3 %v1306_v7  ;;  %v1122_v18 = vpop.permute.xlu0 %1121  ;;  %v1354_v7 = vld [vmem:[#allocation16 + $0x70] sm:$0xff] }
 0x4bb   :  { %v1275_v22 = vmax.f32 %v2369_v21, %v2371_v3  ;;  %v1174_v24 = vmax.f32 %v2365_v17, %v2367_v20  ;;  %vm1150_vm11 = vcmp.eq.s32.totalorder %v1122_v18, 1 }
 0x4bc   :  { %v967_v25 = vpop.f32.mrf.mxu2 }
 0x4bd   :  { %v968_v63 = vadd.f32 %v2326_v42, %v967_v25  ;;  %v2414_v60 = vpop.permute.xlu1 %1133  ;;  %v1305_v25 = vld [vmem:[#allocation14 + $0x30] sm:$0xff] }
 0x4be   :  { %1328 = vmatpush.msrb.mxu3 %v1305_v25  ;;  %vm1154_vm15 = vcmp.eq.s32.totalorder %v2414_v60, 1 }
 0x4bf   :  { %v1019_v29 = vmul.f32 0.01, %v968_v63  ;;  %vm1003_vm2 = vcmp.gt.f32.partialorder %v968_v63, 0.0 }
 0x4c1   :  { %v1035_v30 = vsel %vm1003_vm2, %v968_v63, %v1019_v29 }
 0x4c2   :  { %v2383_v33 = vsel %vm1147_vm3, %v1035_v30, -1e+30  ;;  %v2385_v34 = vsel %vm1248_vm0, %v1035_v30, -1e+30  ;;  %v1304_v30 = vld [vmem:[#allocation14 + $0x28] sm:$0xff]  ;;  %vm1245_vm3 = vcmp.eq.s32.totalorder %v2348_v19, 1 }
 0x4c3   :  { %v1175_v39 = vmax.f32 %v2340_v31, %v2383_v33  ;;  %v1276_v37 = vmax.f32 %v2381_v32, %v2385_v34  ;;  %1329 = vmatpush.msrb.mxu3 %v1304_v30  ;;  %v1348_v31 = vld [vmem:[#allocation16 + $0x40] sm:$0xff]  ;;  %v1346_v34 = vld [vmem:[#allocation16 + $0x30] sm:$0xff] }
 0x4c4   :  { %v970_v5 = vpop.f32.mrf.mxu2 }
 0x4c5   :  { %v971_v43 = vadd.f32 %v2326_v42, %v970_v5  ;;  %v1232_v63 = vpop.permute.xlu1 %1231 }
 0x4c6   :  { %vm1254_vm14 = vcmp.eq.s32.totalorder %v1232_v63, 1  ;;  %v1352_v63 = vld [vmem:[#allocation16 + $0x60] sm:$0xff] }
 0x4c7   :  { %vm1004_vm4 = vcmp.gt.f32.partialorder %v971_v43, 0.0  ;;  %v1020_v1 = vmul.f32 0.01, %v971_v43 }
 0x4c9   :  { %v2395_v36 = vsel %vm1004_vm4, %v971_v43, %v1020_v1  ;;  %v1235_v1 = vpop.permute.xlu2 %1234 }
 0x4ca   :  { %v2398_v45 = vsel %vm1148_vm5, %v2395_v36, -1e+30  ;;  %vm1255_vm1 = vcmp.eq.s32.totalorder %v1235_v1, 1  ;;  %vm1252_vm5 = vcmp.eq.s32.totalorder %v2338_v53, 1  ;;  %v1351_v1 = vld [vmem:[#allocation16 + $0x58] sm:$0xff] }
 0x4cb   :  { %v1176_v28 = vmax.f32 %v2346_v58, %v2398_v45  ;;  %v1345_v45 = vld [vmem:[#allocation16 + $0x28] sm:$0xff] }
 0x4cc   :  { %v973_v47 = vpop.f32.mrf.mxu2 }
 0x4cd   :  { %v974_v50 = vadd.f32 %v2326_v42, %v973_v47  ;;  %v1303_v47 = vld [vmem:[#allocation14 + $0x20] sm:$0xff]  ;;  %v1238_v25 = vpop.permute.xlu1 %1237 }
 0x4ce   :  { %1330 = vmatpush.msrb.mxu3 %v1303_v47 }
 0x4cf   :  { %v1021_v14 = vmul.f32 0.01, %v974_v50  ;;  %vm1005_vm6 = vcmp.gt.f32.partialorder %v974_v50, 0.0 }
 0x4d0   :  { %1331 = vmatpush.msrb.mxu3 %v1302_v57 }
 0x4d1   :  { %v1037_v29 = vsel %vm1005_vm6, %v974_v50, %v1021_v14 }
 0x4d2   :  { %v1266_v44 = vsel %vm1250_vm9, %v1037_v29, -1e+30  ;;  %1332 = vmatpush.msrb.mxu3 %v1301_v41  ;;  %vm1152_vm9 = vcmp.eq.s32.totalorder %v2404_v46, 1 }
 0x4d4   :  { %v976_v51 = vpop.f32.mrf.mxu2 }
 0x4d5   :  { %v977_v4 = vadd.f32 %v2326_v42, %v976_v51  ;;  %v1165_v51 = vsel %vm1149_vm8, %v1037_v29, -1e+30  ;;  %v1261_v29 = vsel %vm1245_vm3, %v2343_v48, -1e+30  ;;  %vm1151_vm8 = vcmp.eq.s32.totalorder %v2400_v35, 1  ;;  %v1241_v35 = vpop.permute.xlu2 %1240 }
 0x4d6   :  { %v1177_v61 = vmax.f32 %v1173_v9, %v1165_v51 }
 0x4d7   :  { %v1022_v16 = vmul.f32 0.01, %v977_v4  ;;  %vm1006_vm7 = vcmp.gt.f32.partialorder %v977_v4, 0.0 }
 0x4d9   :  { %v1038_v5 = vsel %vm1006_vm7, %v977_v4, %v1022_v16  ;;  %v1300_v4 = vld [vmem:[#allocation14 + $0x8] sm:$0xff]  ;;  %vm1249_vm7 = vcmp.eq.s32.totalorder %v2379_v62, 1 }
 0x4da   :  { %v1166_v40 = vsel %vm1150_vm11, %v1038_v5, -1e+30  ;;  %v1267_v52 = vsel %vm1251_vm12, %v1038_v5, -1e+30  ;;  %1333 = vmatpush.msrb.mxu3 %v1300_v4  ;;  %v1353_v16 = vld [vmem:[#allocation16 + $0x68] sm:$0xff]  ;;  %v1140_v5 = vpop.permute.xlu0 %1139  ;;  %vm1256_vm11 = vcmp.eq.s32.totalorder %v1238_v25, 1 }
 0x4db   :  { %v1178_v12 = vmax.f32 %v1174_v24, %v1166_v40  ;;  %v1265_v19 = vsel %vm1249_vm7, %v2395_v36, -1e+30  ;;  %vm1156_vm12 = vcmp.eq.s32.totalorder %v1140_v5, 1  ;;  %v1350_v36 = vld [vmem:[#allocation16 + $0x50] sm:$0xff]  ;;  %v1347_v4 = vld [vmem:[#allocation16 + $0x38] sm:$0xff]  ;;  %v1386_v5 = vld [vmem:[#allocation17 + $0x28] sm:$0xff] }
 0x4dc   :  { %v2406_v38 = vpop.f32.mrf.mxu2  ;;  %v1391_v25 = vld [vmem:[#allocation17 + $0x50] sm:$0xff] }
 0x4dd   :  { %v980_v11 = vadd.f32 %v2326_v42, %v2406_v38 }
 0x4df   :  { %v1023_v14 = vmul.f32 0.01, %v980_v11  ;;  %vm1007_vm2 = vcmp.gt.f32.partialorder %v980_v11, 0.0 }
 0x4e4   :  { %v2412_v23 = vpop.f32.mrf.mxu2 }
 0x4e5   :  { %v983_v9 = vadd.f32 %v2326_v42, %v2412_v23  ;;  %v1355_v23 = vld [vmem:[#allocation16 + $0x78] sm:$0xff] }
 0x4e7   :  { %v1024_v60 = vmul.f32 0.01, %v983_v9  ;;  %vm1008_vm4 = vcmp.gt.f32.partialorder %v983_v9, 0.0 }
 0x4e9   :  { %v1040_v30 = vsel %vm1008_vm4, %v983_v9, %v1024_v60  ;;  %v1343_v9 = vld [vmem:[#allocation16 + $0x18] sm:$0xff]  ;;  %v1394_v60 = vld [vmem:[#allocation17 + $0x68] sm:$0xff] }
 0x4ec   :  { %v985_v8 = vpop.f32.mrf.mxu2 }
 0x4ed   :  { %v986_v13 = vadd.f32 %v2326_v42, %v985_v8  ;;  %v1278_v8 = vmax.f32 %v1274_v10, %v1266_v44  ;;  %v1299_v10 = vld [vmem:[#allocation14] sm:$0xff]  ;;  %v1168_v44 = vsel %vm1152_vm9, %v1040_v30, -1e+30 }
 0x4ee   :  { %1334 = vmatpush.msrb.mxu3 %v1299_v10 }
 0x4ef   :  { %v1025_v26 = vmul.f32 0.01, %v986_v13  ;;  %vm1009_vm10 = vcmp.gt.f32.partialorder %v986_v13, 0.0 }
 0x4f0   :  { %1360 = vmatpush.msra.mxu3 %v1355_v23  ;;  %v1396_v23 = vld [vmem:[#allocation17 + $0x78] sm:$0xff] }
 0x4f1   :  { %v1041_v27 = vsel %vm1009_vm10, %v986_v13, %v1025_v26  ;;  %v1279_v13 = vmax.f32 %v1275_v22, %v1267_v52  ;;  %v1039_v26 = vsel %vm1007_vm2, %v980_v11, %v1023_v14  ;;  %vm1253_vm10 = vcmp.eq.s32.totalorder %v2408_v54, 1  ;;  %v1340_v14 = vld [vmem:[#allocation16] sm:$0xff] }
 0x4f2   :  { %v1169_v50 = vsel %vm1153_vm13, %v1041_v27, -1e+30  ;;  %v1270_v2 = vsel %vm1254_vm14, %v1041_v27, -1e+30  ;;  %1361 = vmatpush.msra.mxu3 %v1354_v7  ;;  %v1167_v47 = vsel %vm1151_vm8, %v1039_v26, -1e+30  ;;  %v1277_v54 = vmax.f32 %v1261_v29, %v1265_v19 }
 0x4f3   :  { %v1181_v55 = vmax.f32 %v1177_v61, %v1169_v50  ;;  %v1282_v17 = vmax.f32 %v1278_v8, %v1270_v2  ;;  %v1268_v48 = vsel %vm1252_vm5, %v1039_v26, -1e+30  ;;  %v1269_v27 = vsel %vm1253_vm10, %v1040_v30, -1e+30  ;;  %v1395_v7 = vld [vmem:[#allocation17 + $0x70] sm:$0xff]  ;;  %v1390_v26 = vld [vmem:[#allocation17 + $0x48] sm:$0xff] }
 0x4f4   :  { %v988_v43 = vpop.f32.mrf.mxu2  ;;  %1362 = vmatpush.msra.mxu3 %v1353_v16  ;;  %vm1155_vm13 = vcmp.eq.s32.totalorder %v2417_v0, 1  ;;  %v1179_v53 = vmax.f32 %v1175_v39, %v1167_v47  ;;  %v1280_v52 = vmax.f32 %v1276_v37, %v1268_v48  ;;  %v1180_v0 = vmax.f32 %v1176_v28, %v1168_v44  ;;  %v1393_v16 = vld [vmem:[#allocation17 + $0x60] sm:$0xff]  ;;  %v1388_v29 = vld [vmem:[#allocation17 + $0x38] sm:$0xff]  ;;  %v1387_v30 = vld [vmem:[#allocation17 + $0x30] sm:$0xff] }
 0x4f5   :  { %v989_v56 = vadd.f32 %v2326_v42, %v988_v43  ;;  %v1385_v19 = vld [vmem:[#allocation17 + $0x20] sm:$0xff] }
 0x4f6   :  { %1363 = vmatpush.msra.mxu3 %v1352_v63  ;;  %v1389_v63 = vld [vmem:[#allocation17 + $0x40] sm:$0xff] }
 0x4f7   :  { %v1026_v59 = vmul.f32 0.01, %v989_v56  ;;  %vm1010_vm0 = vcmp.gt.f32.partialorder %v989_v56, 0.0  ;;  %v1381_v44 = vld [vmem:[#allocation17] sm:$0xff] }
 0x4f8   :  { %1364 = vmatpush.msra.mxu3 %v1351_v1  ;;  %v1523_v1 = vld [vmem:[%s2507_s16] ss:$0 sm:$0xff] }
 0x4f9   :  { %v1042_v15 = vsel %vm1010_vm0, %v989_v56, %v1026_v59  ;;  %v1281_v59 = vmax.f32 %v1277_v54, %v1269_v27  ;;  %vm1295_vm0 = vcmask 1040384   ;;  %v1437_v27 = vld [vmem:[#allocation19 + $0x78] sm:$0xff]  ;;  %v1434_v54 = vld [vmem:[#allocation19 + $0x60] sm:$0xff] }
 0x4fa   :  { %v1170_v49 = vsel %vm1154_vm15, %v1042_v15, -1e+30  ;;  %v1271_v6 = vsel %vm1255_vm1, %v1042_v15, -1e+30  ;;  %vm1257_vm15 = vcmp.eq.s32.totalorder %v1241_v35, 1  ;;  %1365 = vmatpush.msra.mxu3 %v1350_v36  ;;  %vm1297_vm1 = vcmask 1041408  }
 0x4fb   :  { %v1182_v20 = vmax.f32 %v1178_v12, %v1170_v49  ;;  %v1283_v24 = vmax.f32 %v1279_v13, %v1271_v6  ;;  %v1344_v13 = vld [vmem:[#allocation16 + $0x20] sm:$0xff]  ;;  %v1382_v35 = vld [vmem:[#allocation17 + $0x8] sm:$0xff]  ;;  %v1436_v36 = vld [vmem:[#allocation19 + $0x70] sm:$0xff] }
 0x4fc   :  { %v991_v21 = vpop.f32.mrf.mxu2 }
 0x4fd   :  { %v2446_v3 = vmax.f32 %v1181_v55, %v1182_v20  ;;  %v2448_v22 = vmax.f32 %v1282_v17, %v1283_v24  ;;  %v992_v38 = vadd.f32 %v2326_v42, %v991_v21 }
 0x4ff   :  { %v1027_v18 = vmul.f32 0.01, %v992_v38  ;;  %vm1011_vm6 = vcmp.gt.f32.partialorder %v992_v38, 0.0 }
 0x501   :  { %v1043_v51 = vsel %vm1011_vm6, %v992_v38, %v1027_v18  ;;  %v1341_v38 = vld [vmem:[#allocation16 + $0x8] sm:$0xff]  ;;  %v1392_v18 = vld [vmem:[#allocation17 + $0x58] sm:$0xff] }
 0x502   :  { %v1171_v56 = vsel %vm1155_vm13, %v1043_v51, -1e+30  ;;  %v1272_v40 = vsel %vm1256_vm11, %v1043_v51, -1e+30 }
 0x503   :  { %v1183_v33 = vmax.f32 %v1179_v53, %v1171_v56  ;;  %v1284_v39 = vmax.f32 %v1280_v52, %v1272_v40  ;;  %v1433_v56 = vld [vmem:[#allocation19 + $0x58] sm:$0xff]  ;;  %v1432_v53 = vld [vmem:[#allocation19 + $0x50] sm:$0xff]  ;;  %v1431_v40 = vld [vmem:[#allocation19 + $0x48] sm:$0xff] }
 0x504   :  { %v994_v43 = vpop.f32.mrf.mxu2  ;;  %v1429_v52 = vld [vmem:[#allocation19 + $0x38] sm:$0xff] }
 0x505   :  { %v995_v62 = vadd.f32 %v2326_v42, %v994_v43  ;;  %v1349_v42 = vld [vmem:[#allocation16 + $0x48] sm:$0xff]  ;;  %v1384_v43 = vld [vmem:[#allocation17 + $0x18] sm:$0xff] }
 0x506   :  { %1366 = vmatpush.msra.mxu3 %v1349_v42  ;;  %v1430_v42 = vld [vmem:[#allocation19 + $0x40] sm:$0xff] }
 0x507   :  { %v1028_v46 = vmul.f32 0.01, %v995_v62  ;;  %vm1012_vm14 = vcmp.gt.f32.partialorder %v995_v62, 0.0 }
 0x508   :  { %1367 = vmatpush.msra.mxu3 %v1348_v31 }
 0x509   :  { %v1044_v57 = vsel %vm1012_vm14, %v995_v62, %v1028_v46  ;;  %v1383_v62 = vld [vmem:[#allocation17 + $0x10] sm:$0xff]  ;;  %v1435_v46 = vld [vmem:[#allocation19 + $0x68] sm:$0xff] }
 0x50a   :  { %v1172_v41 = vsel %vm1156_vm12, %v1044_v57, -1e+30  ;;  %v1273_v61 = vsel %vm1257_vm15, %v1044_v57, -1e+30  ;;  %1368 = vmatpush.msra.mxu3 %v1347_v4  ;;  %v1428_v57 = vld [vmem:[#allocation19 + $0x30] sm:$0xff]  ;;  %v1422_v4 = vld [vmem:[#allocation19] sm:$0xff] }
 0x50b   :  { %v1184_v50 = vmax.f32 %v1180_v0, %v1172_v41  ;;  %v1285_v2 = vmax.f32 %v1281_v59, %v1273_v61  ;;  %v1427_v0 = vld [vmem:[#allocation19 + $0x28] sm:$0xff]  ;;  %v1426_v59 = vld [vmem:[#allocation19 + $0x20] sm:$0xff]  ;;  %v1425_v41 = vld [vmem:[#allocation19 + $0x18] sm:$0xff] }
 0x50c   :  { %1369 = vmatpush.msra.mxu3 %v1346_v34  ;;  %v1524_v61 = vld [vmem:[%s2509_s18] ss:$0 sm:$0xff] }
 0x50d   :  { %v1186_v8 = vmax.f32 %v1183_v33, %v1184_v50  ;;  %v1287_v32 = vmax.f32 %v1284_v39, %v1285_v2  ;;  %v1424_v50 = vld [vmem:[#allocation19 + $0x10] sm:$0xff]  ;;  %v1423_v2 = vld [vmem:[#allocation19 + $0x8] sm:$0xff] }
 0x50e   :  { %1370 = vmatpush.msra.mxu3 %v1345_v45 }
 0x50f   :  { %v1187_v37 = vmax.f32 %v2446_v3, %v1186_v8  ;;  %v1288_v58 = vmax.f32 %v2448_v22, %v1287_v32  ;;  %v1342_v22 = vld [vmem:[#allocation16 + $0x10] sm:$0xff]  ;;  %v1525_v8 = vld [vmem:[%s2511_s20] ss:$0 sm:$0xff] }
 0x510   :  { %1371 = vmatpush.msra.mxu3 %v1344_v13 }
 0x511   :  { %v1188_v28 = vrot.slane %v1187_v37, 4  ;;  %v1289_v12 = vrot.slane %v1288_v58, 4 }
 0x512   :  { %1372 = vmatpush.msra.mxu3 %v1343_v9 }
 0x513   :  { %v1189_v15 = vmax.f32 %v1187_v37, %v1188_v28  ;;  %v1290_v11 = vmax.f32 %v1288_v58, %v1289_v12  ;;  %v1526_v58 = vld [vmem:[%s2513_s22] ss:$0 sm:$0xff] }
 0x514   :  { %1373 = vmatpush.msra.mxu3 %v1342_v22 }
 0x515   :  { %v1190_v49 = vrot.slane %v1189_v15, 2  ;;  %v1291_v6 = vrot.slane %v1290_v11, 2 }
 0x516   :  { %1374 = vmatpush.msra.mxu3 %v1341_v38 }
 0x517   :  { %v1191_v10 = vmax.f32 %v1189_v15, %v1190_v49  ;;  %v1292_v55 = vmax.f32 %v1290_v11, %v1291_v6 }
 0x518   :  { %1375 = vmatpush.msra.mxu3 %v1340_v14 }
 0x519   :  { %v1192_v17 = vrot.slane %v1191_v10, 1  ;;  %v1293_v20 = vrot.slane %v1292_v55, 1 }
 0x51b   :  { %v1193_v24 = vmax.f32 %v1191_v10, %v1192_v17  ;;  %v1294_v21 = vmax.f32 %v1292_v55, %v1293_v20 }
 0x51d   :  { %v1296_v3 = vsel %vm1295_vm0, %v1193_v24, %v1294_v21 }
 0x51e   :  { %1485 = vmatmul.msk.f32.vlgmr.msrb.gmra.mxu3 %vm1297_vm1, %v1296_v3 }
 0x51f   :  { %1401 = vmatpush.msrb.mxu3 %v1396_v23 }
 0x521   :  { %1402 = vmatpush.msrb.mxu3 %v1395_v7 }
 0x523   :  { %1403 = vmatpush.msrb.mxu3 %v1394_v60 }
 0x525   :  { %1404 = vmatpush.msrb.mxu3 %v1393_v16 }
 0x527   :  { %1405 = vmatpush.msrb.mxu3 %v1392_v18 }
 0x529   :  { %1406 = vmatpush.msrb.mxu3 %v1391_v25 }
 0x52b   :  { %1407 = vmatpush.msrb.mxu3 %v1390_v26 }
 0x52d   :  { %1408 = vmatpush.msrb.mxu3 %v1389_v63 }
 0x52f   :  { %1409 = vmatpush.msrb.mxu3 %v1388_v29 }
 0x531   :  { %1410 = vmatpush.msrb.mxu3 %v1387_v30 }
 0x533   :  { %1411 = vmatpush.msrb.mxu3 %v1386_v5 }
 0x535   :  { %1412 = vmatpush.msrb.mxu3 %v1385_v19 }
 0x537   :  { %1413 = vmatpush.msrb.mxu3 %v1384_v43 }
 0x539   :  { %1414 = vmatpush.msrb.mxu3 %v1383_v62 }
 0x53b   :  { %1415 = vmatpush.msrb.mxu3 %v1382_v35 }
 0x53d   :  { %1416 = vmatpush.msrb.mxu3 %v1381_v44 }
 0x5a1   :  { %v1336_v47 = vpop.f32.mrf.mxu3 }
 0x5a2   :  { %v1337_v51 = vadd.f32 %v1523_v1, %v1336_v47 }
 0x5a4   :  { %v1339_v48 = vmax.f32 %v1337_v51, 0.0 }
 0x5a6   :  { %1376 = vmatmul.f32.vlgmr.msra.gmra.mxu3 %v1339_v48 }
 0x5a7   :  { %1442 = vmatpush.msra.mxu3 %v1437_v27 }
 0x5a9   :  { %1443 = vmatpush.msra.mxu3 %v1436_v36 }
 0x5ab   :  { %1444 = vmatpush.msra.mxu3 %v1435_v46 }
 0x5ad   :  { %1445 = vmatpush.msra.mxu3 %v1434_v54 }
 0x5af   :  { %1446 = vmatpush.msra.mxu3 %v1433_v56 }
 0x5b1   :  { %1447 = vmatpush.msra.mxu3 %v1432_v53 }
 0x5b3   :  { %1448 = vmatpush.msra.mxu3 %v1431_v40 }
 0x5b5   :  { %1449 = vmatpush.msra.mxu3 %v1430_v42 }
 0x5b7   :  { %1450 = vmatpush.msra.mxu3 %v1429_v52 }
 0x5b9   :  { %1451 = vmatpush.msra.mxu3 %v1428_v57 }
 0x5bb   :  { %1452 = vmatpush.msra.mxu3 %v1427_v0 }
 0x5bd   :  { %1453 = vmatpush.msra.mxu3 %v1426_v59 }
 0x5bf   :  { %1454 = vmatpush.msra.mxu3 %v1425_v41 }
 0x5c1   :  { %1455 = vmatpush.msra.mxu3 %v1424_v50 }
 0x5c3   :  { %1456 = vmatpush.msra.mxu3 %v1423_v2 }
 0x5c5   :  { %1457 = vmatpush.msra.mxu3 %v1422_v4 }
 0x629   :  { %v1377_v31 = vpop.f32.mrf.mxu3 }
 0x62a   :  { %v1378_v33 = vadd.f32 %v1524_v61, %v1377_v31 }
 0x62c   :  { %v1380_v39 = vmax.f32 %v1378_v33, 0.0 }
 0x62e   :  { %1417 = vmatmul.f32.vlgmr.msrb.gmra.mxu3 %v1380_v39 }
 0x6b1   :  { %v1418_v32 = vpop.f32.mrf.mxu3 }
 0x6b2   :  { %v1419_v34 = vadd.f32 %v1525_v8, %v1418_v32 }
 0x6b4   :  { %v1421_v37 = vmax.f32 %v1419_v34, 0.0 }
 0x6b6   :  { %1458 = vmatmul.f32.vlgmr.msra.gmra.mxu3 %v1421_v37 }
 0x739   :  { %v1459_v45 = vpop.f32.mrf.mxu3 }
 0x73a   :  { %v1460_v28 = vadd.f32 %v1526_v58, %v1459_v45 }
 0x73c   :  { %1462 = vst [vmem:[#allocation20] sm:$0xff] %v1460_v28 }
 0x73d   :  { %1473 = dma.vmem_to_hbm [thread:$0]  %s1469_s25, 128, %s1471_s1, [#allocation4]  }
 0x73e   :  { %1827 = dma.done.wait [#allocation4], 128  }
 0x73f   :  { %1828 = vsyncadd [#allocation4], 4294967168 }
 0x740   :  { %1478 = vsyncpa [#allocation3], 1 }
 0x741   :  { %1479 = vsyncpa [#allocation6], 1 }
 0x742   :  { %1480 = vsyncpa [#allocation9], 1 }
 0x743   :  { %1481 = vsyncpa [#allocation12], 1 }
 0x744   :  { %1482 = vsyncpa [#allocation15], 1 }
 0x745   :  { %1483 = vsyncpa [#allocation18], 1 }
 0x746   :  { %1484 = vsyncpa [#allocation4], 1 }

</bundles_post_ra>
